<compile_context>
chip_gen: v7x
topology: tpu7x:2x2x1
jax: 0.10.0
libtpu: 0.0.40
codegen_flags: <defaults>
</compile_context>

<pallas_src>
import jax
import jax.numpy as jnp
from jax.experimental import pallas as pl
from jax.experimental.pallas import tpu as pltpu

# ---------------- module hyper-parameters (mirrors KANLinear.__init__) -------
IN_FEATURES = 16
OUT_FEATURES = 32
GRID_SIZE = 5
SPLINE_ORDER = 3
GRID_RANGE = (-1.0, 1.0)
N_COEFF = GRID_SIZE + SPLINE_ORDER              # = 8 spline coefficients / feature
N_GRID = GRID_SIZE + 2 * SPLINE_ORDER + 1       # = 12 knots / feature
FUSED_K = IN_FEATURES * (1 + N_COEFF)           # = 144 fused contraction dim

# Batch tile: multiple of 256 (MXU/lane friendly on v5e/v6e/v7x); VMEM use per
# tile is well under 1 MiB, so the default scoped-VMEM limit is plenty.
TILE_B = 256

# Uniform-grid Cox-de Boor denominators: grid[i+k] - grid[i] == k*h for all i.
# TODO(synk): a non-uniform grid (e.g. after update_grid) would need per-knot
# denominator tables passed into the kernel instead of these baked constants.
_H = (GRID_RANGE[1] - GRID_RANGE[0]) / GRID_SIZE
INV_DENOM = tuple(1.0 / (k * _H) for k in range(1, SPLINE_ORDER + 1))


# ----------------------------- Pallas kernel ---------------------------------
def kan_linear_kernel(xT_ref, gridT_ref, w_ref, outT_ref, act_ref):
    """One batch tile: outT = W_fused @ [SiLU(x); b_splines(x)]  -> (Out, TILE_B)."""
    xT = xT_ref[...]                        # (In, TILE_B) f32, batch on lanes
    gT = gridT_ref[...]                     # (N_GRID, In) f32

    xe = xT[None, :, :]                     # (1, In, TILE_B)
    gb = gT[:, :, None]                     # (N_GRID, In, 1): per-(knot, feat) scalar

    # degree-0 bases: indicator of the knot interval (knot index leading axis).
    bases = jnp.logical_and(xe >= gb[:-1], xe < gb[1:]).astype(jnp.float32)
    # bases: (N_GRID-1, In, TILE_B)

    # Cox-de Boor recursion; uniform grid -> constant reciprocal denominators,
    # and leading-axis slices are whole-vreg selects (no lane masking).
    for k in range(1, SPLINE_ORDER + 1):
        inv = INV_DENOM[k - 1]
        left = (xe - gb[:-(k + 1)]) * inv          # (N_GRID-1-k, In, TILE_B)
        right = (gb[k + 1:] - xe) * inv
        bases = left * bases[:-1] + right * bases[1:]
    # bases: (N_COEFF, In, TILE_B)

    # Fused activation (FUSED_K, TILE_B):
    #   rows [0, In)          -> SiLU(x) features
    #   row  In + j*In + i    -> bases[j, i]  (K-major / In-minor ordering,
    #                            matching the fused-weight column order)
    act_ref[0:IN_FEATURES, :] = xT * jax.nn.sigmoid(xT)     # sigmoid -> EUP slot
    for j in range(N_COEFF):
        lo = IN_FEATURES * (1 + j)
        act_ref[lo:lo + IN_FEATURES, :] = bases[j]

    # Single MXU matmul replaces base dot + 8 per-coefficient spline dots.
    outT_ref[...] = jnp.dot(w_ref[...], act_ref[...],
                            preferred_element_type=jnp.float32)


# ------------------------------- wrapper --------------------------------------
@jax.jit
def kan_linear_forward(x, grid, base_weight, spline_weight, spline_scaler):
    """x: (B, In) f32.  Returns (B, Out) f32 (same as PyTorch KANLinear.forward)."""
    batch = x.shape[0]

    # scaled_spline_weight = spline_weight * spline_scaler[..., None]   (Out, In, K)
    scaled_spline = spline_weight * spline_scaler[:, :, None]

    # Fused weight (Out, In*(1+K)): base columns first, then spline columns in
    # K-major / In-minor order so they line up with the kernel's activation rows
    # (which come from bases laid out as (K, In, TILE_B)).  This is equivalent
    # to PyTorch's bases.view(B,-1) @ scaled_spline_weight.view(Out,-1).T.
    w_spline = jnp.transpose(scaled_spline, (0, 2, 1)).reshape(
        OUT_FEATURES, N_COEFF * IN_FEATURES)
    w_fused = jnp.concatenate([base_weight, w_spline], axis=1)      # (Out, 144)

    grid_t = jnp.transpose(grid, (1, 0))                             # (N_GRID, In)

    # Batch on the lane axis; pad to a multiple of TILE_B (padded rows sliced off).
    x_t = jnp.transpose(x, (1, 0))                                   # (In, B)
    num_tiles = pl.cdiv(batch, TILE_B)
    b_pad = num_tiles * TILE_B
    if b_pad != batch:
        x_t = jnp.pad(x_t, ((0, 0), (0, b_pad - batch)))

    out_t = pl.pallas_call(
        kan_linear_kernel,
        out_shape=jax.ShapeDtypeStruct((OUT_FEATURES, b_pad), jnp.float32),
        grid_spec=pltpu.PrefetchScalarGridSpec(
            num_scalar_prefetch=0,
            grid=(num_tiles,),
            in_specs=[
                pl.BlockSpec((IN_FEATURES, TILE_B), lambda i: (0, i)),   # x tile
                pl.BlockSpec((N_GRID, IN_FEATURES), lambda i: (0, 0)),   # grid (resident)
                pl.BlockSpec((OUT_FEATURES, FUSED_K), lambda i: (0, 0)), # fused weight
            ],
            out_specs=pl.BlockSpec((OUT_FEATURES, TILE_B), lambda i: (0, i)),
            scratch_shapes=[pltpu.VMEM((FUSED_K, TILE_B), jnp.float32)],
        ),
        compiler_params=pltpu.CompilerParams(
            dimension_semantics=("parallel",)),
    )(x_t, grid_t, w_fused)

    # Back to the module's (B, Out) contract (layout plumbing outside the kernel).
    return jnp.transpose(out_t[:, :batch], (1, 0))


# --------------------------- pure-JAX reference --------------------------------
def kan_linear_ref(x, grid, base_weight, spline_weight, spline_scaler):
    xe = x[:, :, None]
    gb = grid[None, :, :]
    bases = jnp.logical_and(xe >= gb[:, :, :-1], xe < gb[:, :, 1:]).astype(x.dtype)
    for k in range(1, SPLINE_ORDER + 1):
        bases = ((xe - gb[:, :, : -(k + 1)]) / (gb[:, :, k:-1] - gb[:, :, : -(k + 1)])
                 * bases[:, :, :-1]
                 + (gb[:, :, k + 1:] - xe) / (gb[:, :, k + 1:] - gb[:, :, 1:-k])
                 * bases[:, :, 1:])
    base_out = jax.nn.silu(x) @ base_weight.T
    scaled = spline_weight * spline_scaler[:, :, None]
    spline_out = bases.reshape(x.shape[0], -1) @ scaled.reshape(OUT_FEATURES, -1).T
    return base_out + spline_out


# ------------------------------- main ------------------------------------------
if __name__ == "__main__":
    key = jax.random.PRNGKey(0)
    k_x, k_bw, k_sw, k_ss = jax.random.split(key, 4)

    # Non-multiple of TILE_B on purpose: exercises padding + a 2-step batch grid.
    batch = 300

    # Deterministic synthetic parameters with the shapes from __init__.
    # TODO(synk): reset_parameters uses kaiming_uniform + curve2coeff (lstsq) noise
    # init; replaced with deterministic uniform init — forward semantics unchanged.
    base_weight = jax.random.uniform(
        k_bw, (OUT_FEATURES, IN_FEATURES), jnp.float32, -0.5, 0.5)
    spline_weight = jax.random.uniform(
        k_sw, (OUT_FEATURES, IN_FEATURES, N_COEFF), jnp.float32, -0.1, 0.1)
    spline_scaler = jax.random.uniform(
        k_ss, (OUT_FEATURES, IN_FEATURES), jnp.float32, 0.5, 1.5)

    # grid buffer: (in_features, grid_size + 2*spline_order + 1), uniform knots.
    h = (GRID_RANGE[1] - GRID_RANGE[0]) / GRID_SIZE
    grid_row = (jnp.arange(-SPLINE_ORDER, GRID_SIZE + SPLINE_ORDER + 1,
                           dtype=jnp.float32) * h + GRID_RANGE[0])
    grid = jnp.broadcast_to(grid_row, (IN_FEATURES, N_GRID))

    # input
    x = jax.random.uniform(k_x, (batch, IN_FEATURES), jnp.float32, -1.0, 1.0)

    out = kan_linear_forward(x, grid, base_weight, spline_weight, spline_scaler)
    out = jax.block_until_ready(out)

    ref = kan_linear_ref(x, grid, base_weight, spline_weight, spline_scaler)
    assert out.shape == (batch, OUT_FEATURES)
    max_err = jnp.max(jnp.abs(out - ref))
    assert jnp.allclose(out, ref, rtol=1e-4, atol=1e-4), f"max abs err {max_err}"

    print("KERNEL_OK")
</pallas_src>

<mosaic_0001>
module attributes {stable_mosaic.version = 11 : i64} {
  func.func @kan_linear_kernel(%arg0: i32, %arg1: memref<16x256xf32, #tpu.memory_space<vmem>>, %arg2: memref<12x16xf32, #tpu.memory_space<vmem>>, %arg3: memref<32x144xf32, #tpu.memory_space<vmem>>, %arg4: memref<32x256xf32, #tpu.memory_space<vmem>>, %arg5: memref<144x256xf32, #tpu.memory_space<vmem>>) attributes {dimension_semantics = [#tpu.dimension_semantics<parallel>], iteration_bounds = array<i64: 2>, scalar_prefetch = 0 : i64, scratch_operands = 1 : i64, tpu.core_type = #tpu.core_type<tc>, window_params = [{transform_indices = @transform_0, window_bounds = array<i64: 16, 256>}, {pipeline_mode = #tpu.pipeline_mode<synchronous>, transform_indices = @transform_1, window_bounds = array<i64: 12, 16>}, {pipeline_mode = #tpu.pipeline_mode<synchronous>, transform_indices = @transform_2, window_bounds = array<i64: 32, 144>}, {transform_indices = @transform_3, window_bounds = array<i64: 32, 256>}]} {
    %c0 = arith.constant 0 : index
    %c0_0 = arith.constant 0 : index
    %0 = vector.load %arg1[%c0, %c0_0] : memref<16x256xf32, #tpu.memory_space<vmem>>, vector<16x256xf32>
    %c0_1 = arith.constant 0 : index
    %c0_2 = arith.constant 0 : index
    %1 = vector.load %arg2[%c0_1, %c0_2] : memref<12x16xf32, #tpu.memory_space<vmem>>, vector<12x16xf32>
    %2 = vector.shape_cast %0 : vector<16x256xf32> to vector<1x16x256xf32>
    %3 = vector.shape_cast %1 : vector<12x16xf32> to vector<12x16x1xf32>
    %4 = vector.extract_strided_slice %3 {offsets = [0, 0, 0], sizes = [11, 16, 1], strides = [1, 1, 1]} : vector<12x16x1xf32> to vector<11x16x1xf32>
    %5 = vector.broadcast %2 : vector<1x16x256xf32> to vector<11x16x256xf32>
    %6 = vector.broadcast %4 : vector<11x16x1xf32> to vector<11x16x256xf32>
    %7 = arith.cmpf oge, %5, %6 : vector<11x16x256xf32>
    %8 = vector.extract_strided_slice %3 {offsets = [1, 0, 0], sizes = [11, 16, 1], strides = [1, 1, 1]} : vector<12x16x1xf32> to vector<11x16x1xf32>
    %9 = vector.broadcast %2 : vector<1x16x256xf32> to vector<11x16x256xf32>
    %10 = vector.broadcast %8 : vector<11x16x1xf32> to vector<11x16x256xf32>
    %11 = arith.cmpf olt, %9, %10 : vector<11x16x256xf32>
    %12 = arith.andi %7, %11 : vector<11x16x256xi1>
    %13 = arith.extui %12 : vector<11x16x256xi1> to vector<11x16x256xi32>
    %14 = arith.sitofp %13 : vector<11x16x256xi32> to vector<11x16x256xf32>
    %15 = vector.extract_strided_slice %3 {offsets = [0, 0, 0], sizes = [10, 16, 1], strides = [1, 1, 1]} : vector<12x16x1xf32> to vector<10x16x1xf32>
    %16 = vector.broadcast %2 : vector<1x16x256xf32> to vector<10x16x256xf32>
    %17 = vector.broadcast %15 : vector<10x16x1xf32> to vector<10x16x256xf32>
    %18 = arith.subf %16, %17 : vector<10x16x256xf32>
    %cst = arith.constant 2.500000e+00 : f32
    %19 = vector.broadcast %cst : f32 to vector<10x16x256xf32>
    %20 = arith.mulf %18, %19 : vector<10x16x256xf32>
    %21 = vector.extract_strided_slice %3 {offsets = [2, 0, 0], sizes = [10, 16, 1], strides = [1, 1, 1]} : vector<12x16x1xf32> to vector<10x16x1xf32>
    %22 = vector.broadcast %21 : vector<10x16x1xf32> to vector<10x16x256xf32>
    %23 = vector.broadcast %2 : vector<1x16x256xf32> to vector<10x16x256xf32>
    %24 = arith.subf %22, %23 : vector<10x16x256xf32>
    %cst_3 = arith.constant 2.500000e+00 : f32
    %25 = vector.broadcast %cst_3 : f32 to vector<10x16x256xf32>
    %26 = arith.mulf %24, %25 : vector<10x16x256xf32>
    %27 = vector.extract_strided_slice %14 {offsets = [0, 0, 0], sizes = [10, 16, 256], strides = [1, 1, 1]} : vector<11x16x256xf32> to vector<10x16x256xf32>
    %28 = arith.mulf %20, %27 : vector<10x16x256xf32>
    %29 = vector.extract_strided_slice %14 {offsets = [1, 0, 0], sizes = [10, 16, 256], strides = [1, 1, 1]} : vector<11x16x256xf32> to vector<10x16x256xf32>
    %30 = arith.mulf %26, %29 : vector<10x16x256xf32>
    %31 = arith.addf %28, %30 : vector<10x16x256xf32>
    %32 = vector.extract_strided_slice %3 {offsets = [0, 0, 0], sizes = [9, 16, 1], strides = [1, 1, 1]} : vector<12x16x1xf32> to vector<9x16x1xf32>
    %33 = vector.broadcast %2 : vector<1x16x256xf32> to vector<9x16x256xf32>
    %34 = vector.broadcast %32 : vector<9x16x1xf32> to vector<9x16x256xf32>
    %35 = arith.subf %33, %34 : vector<9x16x256xf32>
    %cst_4 = arith.constant 1.250000e+00 : f32
    %36 = vector.broadcast %cst_4 : f32 to vector<9x16x256xf32>
    %37 = arith.mulf %35, %36 : vector<9x16x256xf32>
    %38 = vector.extract_strided_slice %3 {offsets = [3, 0, 0], sizes = [9, 16, 1], strides = [1, 1, 1]} : vector<12x16x1xf32> to vector<9x16x1xf32>
    %39 = vector.broadcast %38 : vector<9x16x1xf32> to vector<9x16x256xf32>
    %40 = vector.broadcast %2 : vector<1x16x256xf32> to vector<9x16x256xf32>
    %41 = arith.subf %39, %40 : vector<9x16x256xf32>
    %cst_5 = arith.constant 1.250000e+00 : f32
    %42 = vector.broadcast %cst_5 : f32 to vector<9x16x256xf32>
    %43 = arith.mulf %41, %42 : vector<9x16x256xf32>
    %44 = vector.extract_strided_slice %31 {offsets = [0, 0, 0], sizes = [9, 16, 256], strides = [1, 1, 1]} : vector<10x16x256xf32> to vector<9x16x256xf32>
    %45 = arith.mulf %37, %44 : vector<9x16x256xf32>
    %46 = vector.extract_strided_slice %31 {offsets = [1, 0, 0], sizes = [9, 16, 256], strides = [1, 1, 1]} : vector<10x16x256xf32> to vector<9x16x256xf32>
    %47 = arith.mulf %43, %46 : vector<9x16x256xf32>
    %48 = arith.addf %45, %47 : vector<9x16x256xf32>
    %49 = vector.extract_strided_slice %3 {offsets = [0, 0, 0], sizes = [8, 16, 1], strides = [1, 1, 1]} : vector<12x16x1xf32> to vector<8x16x1xf32>
    %50 = vector.broadcast %2 : vector<1x16x256xf32> to vector<8x16x256xf32>
    %51 = vector.broadcast %49 : vector<8x16x1xf32> to vector<8x16x256xf32>
    %52 = arith.subf %50, %51 : vector<8x16x256xf32>
    %cst_6 = arith.constant 0.833333313 : f32
    %53 = vector.broadcast %cst_6 : f32 to vector<8x16x256xf32>
    %54 = arith.mulf %52, %53 : vector<8x16x256xf32>
    %55 = vector.extract_strided_slice %3 {offsets = [4, 0, 0], sizes = [8, 16, 1], strides = [1, 1, 1]} : vector<12x16x1xf32> to vector<8x16x1xf32>
    %56 = vector.broadcast %55 : vector<8x16x1xf32> to vector<8x16x256xf32>
    %57 = vector.broadcast %2 : vector<1x16x256xf32> to vector<8x16x256xf32>
    %58 = arith.subf %56, %57 : vector<8x16x256xf32>
    %cst_7 = arith.constant 0.833333313 : f32
    %59 = vector.broadcast %cst_7 : f32 to vector<8x16x256xf32>
    %60 = arith.mulf %58, %59 : vector<8x16x256xf32>
    %61 = vector.extract_strided_slice %48 {offsets = [0, 0, 0], sizes = [8, 16, 256], strides = [1, 1, 1]} : vector<9x16x256xf32> to vector<8x16x256xf32>
    %62 = arith.mulf %54, %61 : vector<8x16x256xf32>
    %63 = vector.extract_strided_slice %48 {offsets = [1, 0, 0], sizes = [8, 16, 256], strides = [1, 1, 1]} : vector<9x16x256xf32> to vector<8x16x256xf32>
    %64 = arith.mulf %60, %63 : vector<8x16x256xf32>
    %65 = arith.addf %62, %64 : vector<8x16x256xf32>
    %66 = arith.negf %0 : vector<16x256xf32>
    %67 = math.exp %66 : vector<16x256xf32>
    %cst_8 = arith.constant 1.000000e+00 : f32
    %68 = vector.broadcast %cst_8 : f32 to vector<16x256xf32>
    %69 = arith.addf %68, %67 : vector<16x256xf32>
    %70 = arith.divf %68, %69 : vector<16x256xf32>
    %71 = arith.mulf %0, %70 : vector<16x256xf32>
    %c0_9 = arith.constant 0 : index
    %c0_10 = arith.constant 0 : index
    %72 = vector.load %arg5[%c0_9, %c0_10] : memref<144x256xf32, #tpu.memory_space<vmem>>, vector<16x256xf32>
    tpu.vector_store %arg5[%c0_9, %c0_10], %71 {strides = array<i32>} : memref<144x256xf32, #tpu.memory_space<vmem>>, vector<16x256xf32>,
    %73 = vector.extract_strided_slice %65 {offsets = [0, 0, 0], sizes = [1, 16, 256], strides = [1, 1, 1]} : vector<8x16x256xf32> to vector<1x16x256xf32>
    %74 = vector.shape_cast %73 : vector<1x16x256xf32> to vector<16x256xf32>
    %c16 = arith.constant 16 : index
    %c0_11 = arith.constant 0 : index
    %75 = vector.load %arg5[%c16, %c0_11] : memref<144x256xf32, #tpu.memory_space<vmem>>, vector<16x256xf32>
    tpu.vector_store %arg5[%c16, %c0_11], %74 {strides = array<i32>} : memref<144x256xf32, #tpu.memory_space<vmem>>, vector<16x256xf32>,
    %76 = vector.extract_strided_slice %65 {offsets = [1, 0, 0], sizes = [1, 16, 256], strides = [1, 1, 1]} : vector<8x16x256xf32> to vector<1x16x256xf32>
    %77 = vector.shape_cast %76 : vector<1x16x256xf32> to vector<16x256xf32>
    %c32 = arith.constant 32 : index
    %c0_12 = arith.constant 0 : index
    %78 = vector.load %arg5[%c32, %c0_12] : memref<144x256xf32, #tpu.memory_space<vmem>>, vector<16x256xf32>
    tpu.vector_store %arg5[%c32, %c0_12], %77 {strides = array<i32>} : memref<144x256xf32, #tpu.memory_space<vmem>>, vector<16x256xf32>,
    %79 = vector.extract_strided_slice %65 {offsets = [2, 0, 0], sizes = [1, 16, 256], strides = [1, 1, 1]} : vector<8x16x256xf32> to vector<1x16x256xf32>
    %80 = vector.shape_cast %79 : vector<1x16x256xf32> to vector<16x256xf32>
    %c48 = arith.constant 48 : index
    %c0_13 = arith.constant 0 : index
    %81 = vector.load %arg5[%c48, %c0_13] : memref<144x256xf32, #tpu.memory_space<vmem>>, vector<16x256xf32>
    tpu.vector_store %arg5[%c48, %c0_13], %80 {strides = array<i32>} : memref<144x256xf32, #tpu.memory_space<vmem>>, vector<16x256xf32>,
    %82 = vector.extract_strided_slice %65 {offsets = [3, 0, 0], sizes = [1, 16, 256], strides = [1, 1, 1]} : vector<8x16x256xf32> to vector<1x16x256xf32>
    %83 = vector.shape_cast %82 : vector<1x16x256xf32> to vector<16x256xf32>
    %c64 = arith.constant 64 : index
    %c0_14 = arith.constant 0 : index
    %84 = vector.load %arg5[%c64, %c0_14] : memref<144x256xf32, #tpu.memory_space<vmem>>, vector<16x256xf32>
    tpu.vector_store %arg5[%c64, %c0_14], %83 {strides = array<i32>} : memref<144x256xf32, #tpu.memory_space<vmem>>, vector<16x256xf32>,
    %85 = vector.extract_strided_slice %65 {offsets = [4, 0, 0], sizes = [1, 16, 256], strides = [1, 1, 1]} : vector<8x16x256xf32> to vector<1x16x256xf32>
    %86 = vector.shape_cast %85 : vector<1x16x256xf32> to vector<16x256xf32>
    %c80 = arith.constant 80 : index
    %c0_15 = arith.constant 0 : index
    %87 = vector.load %arg5[%c80, %c0_15] : memref<144x256xf32, #tpu.memory_space<vmem>>, vector<16x256xf32>
    tpu.vector_store %arg5[%c80, %c0_15], %86 {strides = array<i32>} : memref<144x256xf32, #tpu.memory_space<vmem>>, vector<16x256xf32>,
    %88 = vector.extract_strided_slice %65 {offsets = [5, 0, 0], sizes = [1, 16, 256], strides = [1, 1, 1]} : vector<8x16x256xf32> to vector<1x16x256xf32>
    %89 = vector.shape_cast %88 : vector<1x16x256xf32> to vector<16x256xf32>
    %c96 = arith.constant 96 : index
    %c0_16 = arith.constant 0 : index
    %90 = vector.load %arg5[%c96, %c0_16] : memref<144x256xf32, #tpu.memory_space<vmem>>, vector<16x256xf32>
    tpu.vector_store %arg5[%c96, %c0_16], %89 {strides = array<i32>} : memref<144x256xf32, #tpu.memory_space<vmem>>, vector<16x256xf32>,
    %91 = vector.extract_strided_slice %65 {offsets = [6, 0, 0], sizes = [1, 16, 256], strides = [1, 1, 1]} : vector<8x16x256xf32> to vector<1x16x256xf32>
    %92 = vector.shape_cast %91 : vector<1x16x256xf32> to vector<16x256xf32>
    %c112 = arith.constant 112 : index
    %c0_17 = arith.constant 0 : index
    %93 = vector.load %arg5[%c112, %c0_17] : memref<144x256xf32, #tpu.memory_space<vmem>>, vector<16x256xf32>
    tpu.vector_store %arg5[%c112, %c0_17], %92 {strides = array<i32>} : memref<144x256xf32, #tpu.memory_space<vmem>>, vector<16x256xf32>,
    %94 = vector.extract_strided_slice %65 {offsets = [7, 0, 0], sizes = [1, 16, 256], strides = [1, 1, 1]} : vector<8x16x256xf32> to vector<1x16x256xf32>
    %95 = vector.shape_cast %94 : vector<1x16x256xf32> to vector<16x256xf32>
    %c128 = arith.constant 128 : index
    %c0_18 = arith.constant 0 : index
    %96 = vector.load %arg5[%c128, %c0_18] : memref<144x256xf32, #tpu.memory_space<vmem>>, vector<16x256xf32>
    tpu.vector_store %arg5[%c128, %c0_18], %95 {strides = array<i32>} : memref<144x256xf32, #tpu.memory_space<vmem>>, vector<16x256xf32>,
    %c0_19 = arith.constant 0 : index
    %c0_20 = arith.constant 0 : index
    %97 = vector.load %arg3[%c0_19, %c0_20] : memref<32x144xf32, #tpu.memory_space<vmem>>, vector<32x144xf32>
    %c0_21 = arith.constant 0 : index
    %c0_22 = arith.constant 0 : index
    %98 = vector.load %arg5[%c0_21, %c0_22] : memref<144x256xf32, #tpu.memory_space<vmem>>, vector<144x256xf32>
    %cst_23 = arith.constant dense<0.000000e+00> : vector<32x256xf32>
    %99 = tpu.matmul %97, %98, %cst_23 {dimension_numbers = #tpu.dot_dimension_numbers<[1], [0], [0], [1], [0, 0, 1, 1], [], []>} : vector<32x144xf32>, vector<144x256xf32>, vector<32x256xf32> -> vector<32x256xf32>
    %c0_24 = arith.constant 0 : index
    %c0_25 = arith.constant 0 : index
    %100 = vector.load %arg4[%c0_24, %c0_25] : memref<32x256xf32, #tpu.memory_space<vmem>>, vector<32x256xf32>
    tpu.vector_store %arg4[%c0_24, %c0_25], %99 {strides = array<i32>} : memref<32x256xf32, #tpu.memory_space<vmem>>, vector<32x256xf32>,
    return
  }
  func.func @transform_0(%arg0: i32) -> (i32, i32) {
    %c0_i32 = arith.constant 0 : i32
    %c0_i32_0 = arith.constant 0 : i32
    return %c0_i32, %arg0 : i32, i32
  }
  func.func @transform_1(%arg0: i32) -> (i32, i32) {
    %c0_i32 = arith.constant 0 : i32
    %c0_i32_0 = arith.constant 0 : i32
    %c0_i32_1 = arith.constant 0 : i32
    return %c0_i32, %c0_i32_0 : i32, i32
  }
  func.func @transform_2(%arg0: i32) -> (i32, i32) {
    %c0_i32 = arith.constant 0 : i32
    %c0_i32_0 = arith.constant 0 : i32
    %c0_i32_1 = arith.constant 0 : i32
    return %c0_i32, %c0_i32_0 : i32, i32
  }
  func.func @transform_3(%arg0: i32) -> (i32, i32) {
    %c0_i32 = arith.constant 0 : i32
    %c0_i32_0 = arith.constant 0 : i32
    return %c0_i32, %arg0 : i32, i32
  }
}

</mosaic_0001>

<bundles_post_ra>
// kernel: kan_linear_forward.1
= control target key start
LH: loop header
LB: loop body
LE: loop exit
PB: predicated region body
PF: predicated region fallthrough
CT: control target
= control target key end

     0   :  { %s1699_s12 = smov 0   ;;  %s1701_s13 = smov 0   ;;  %s2898_s0 = inlined_call_operand.vmem [shape: f32[16,512], index: 0, kind: input, shape index: {}]   ;;  %s2899_s1 = inlined_call_operand.vmem [shape: f32[12,16], index: 1, kind: input, shape index: {}]   ;;  %s2900_s2 = inlined_call_operand.vmem [shape: f32[32,144], index: 2, kind: input, shape index: {}]   ;;  %s2901_s3 = inlined_call_operand.vmem [shape: f32[32,512], index: 3, kind: output, shape index: {}]  }
   0x1   :  { %s1703_s14 = smov 0  }
   0x2 LB: > { %s1486_s15 = sadd.s32 4294967295, %s1676_s14   ;;  %s1716_s16 = sadd.s32 1, %s1676_s14   ;;  %s1676_s14 = sphi %s1703_s14, %s3048_s14   ;;  %s1672_s13 = sphi %s1701_s13, %s3047_s13   ;;  %s1668_s12 = sphi %s1699_s12, %s3046_s12  }
   0x3   : > { %s17_s17 = ssub.s32 %s1676_s14, %s1716_s16  ;;  %s20_s18 = sadd.s32 1, %s1672_s13 }
   0x4   : > { %p18_p0 = scmp.eq.s32.totalorder %s17_s17, 0  ;;  %p27_p1 = scmp.ne.s32.totalorder %s1672_s13, %s1668_s12 }
   0x5   : > { %p28_p2 = scmp.eq.s32.totalorder %s1676_s14, 0  ;;  %p99_p3 = scmp.eq.s32.totalorder %s1486_s15, 1 }
   0x6   : > { %s1727_s19 = scalar_select %p18_p0, %s1672_s13, %s20_s18  }
   0x7   : > { %p29_p4 = por %p28_p2, %p27_p1  ;;  %p1729_p5 = por %p99_p3, %p27_p1 }
   0x8   : > { %p1489_p6 = scmp.ge.s32.totalorder %s1676_s14, 2 }
   0xa   : > { %127 = sbr.rel (%p1489_p6) target bundleno = 24 (0x18), region = 24 }
  0x11   : > { %130 = sbr.rel (!%p29_p4) target bundleno = 24 (0x18), region = 28  ;;  %s132_s21 = sand.u32 (%p29_p4), 1, %s1672_s13  }
  0x12   : > { %s1553_s22 = sshll.u32 (%p29_p4), %s1676_s14, 4  ;;  %s1490_s23 = sshll.u32 (%p29_p4), %s132_s21, 5 }
  0x13   : > { %s137_s26 = scalar_lea.vmem (%p29_p4), %s2898_s0, %s1553_s22  ;;  %s134_s27 = scalar_lea.vmem (%p29_p4), [#allocation3], %s1490_s23 }
  0x14   : > { %v150_v0 = vld [vmem:[%s137_s26] sm:$0xff] (%p29_p4)  ;;  %v152_v1 = vld [vmem:[%s137_s26 + $0x8] sm:$0xff] (%p29_p4) }
  0x15   : > { %v154_v2 = vld [vmem:[%s137_s26 + $0x20] sm:$0xff] (%p29_p4)  ;;  %151 = vst [vmem:[%s134_s27] sm:$0xff] (%p29_p4), %v150_v0  ;;  %153 = vst [vmem:[%s134_s27 + $0x8] sm:$0xff] (%p29_p4), %v152_v1  ;;  %v156_v3 = vld [vmem:[%s137_s26 + $0x28] sm:$0xff] (%p29_p4) }
  0x16   : > { %155 = vst [vmem:[%s134_s27 + $0x10] sm:$0xff] (%p29_p4), %v154_v2  ;;  %157 = vst [vmem:[%s134_s27 + $0x18] sm:$0xff] (%p29_p4), %v156_v3 }
  0x18 PF: > { %p1493_p7 = scmp.ge.s32.totalorder %s1676_s14, 1  ;;  %p162_p8 = scmp.lt.s32.totalorder %s1676_s14, 3 }
  0x1a   : > { %p163_p9 = pnand %p1493_p7, %p162_p8 }
  0x1c   : > { %166 = sbr.rel (%p163_p9) target bundleno = 585 (0x249), region = 51 }
  0x23   : > { %v199_v4 = vlaneseq  ;;  %s169_s28 = sand.u32 1, %s1668_s12   ;;  %v197_v6 = vld [vmem:[%s2899_s1] sm:$0xff]  ;;  %v198_v40 = vld [vmem:[%s2899_s1 + $0x8] sm:$0xf]  ;;  %v2915_v0 = vmov 0.0   ;;  %s1554_s12 = sshll.u32 (%p1729_p5), %s1486_s15, 4 }
  0x24   : > { %s1494_s29 = sshll.u32 %s169_s28, 5  ;;  %s1398_s8 = scalar_lea.vmem (%p1729_p5), %s2901_s3, %s1554_s12 }
  0x25   : > { %v1744_v5 = vshrl.u32 %v199_v4, 7  ;;  %s1751_s5 = scalar_lea.vmem [#allocation3], %s1494_s29 }
  0x26   : > { %v1754_v9 = vld [vmem:[%s1751_s5 + $0x8] sm:$0xff]  ;;  %v1761_v12 = vld [vmem:[%s1751_s5] sm:$0xff]  ;;  %v1764_v13 = vld [vmem:[%s1751_s5 + $0x10] sm:$0xff] }
  0x27   : > { %v212_v7 = vsub.s32 1, %v1744_v5  ;;  %v201_v8 = vsub.s32 0, %v1744_v5  ;;  %v1767_v14 = vld [vmem:[%s1751_s5 + $0x18] sm:$0xff]  ;;  %v223_v15 = vsub.s32 2, %v1744_v5  ;;  %v1541_v16 = vmul.f32 -1.442695, %v1754_v9 }
  0x28   : > { %v1543_v17 = vmul.f32 -1.442695, %v1767_v14  ;;  %v1540_v18 = vmul.f32 -1.442695, %v1761_v12  ;;  %v1542_v19 = vmul.f32 -1.442695, %v1764_v13 }
  0x29   : > { %v213_v10 = vrot.slane %v197_v6, %v212_v7  ;;  %v202_v11 = vrot.slane %v197_v6, %v201_v8  ;;  %1634 = vpow2.f32 %v1541_v16  ;;  %v224_v20 = vrot.slane %v197_v6, %v223_v15 }
  0x2a   : > { %1636 = vpow2.f32 %v1543_v17  ;;  %v234_v21 = vsub.s32 3, %v1744_v5  ;;  %v245_v23 = vsub.s32 4, %v1744_v5  ;;  %v256_v26 = vsub.s32 5, %v1744_v5 }
  0x2b   : > { %215 = vbcast.lane.b32.xlu1 %v213_v10, 256  ;;  %204 = vbcast.lane.b32.xlu0 %v202_v11, 256  ;;  %1638 = vpow2.f32 %v1540_v18  ;;  %v267_v34 = vsub.s32 6, %v1744_v5  ;;  %v278_v37 = vsub.s32 7, %v1744_v5  ;;  %v290_v46 = vrot.slane %v198_v40, %v201_v8 }
  0x2c   : > { %1640 = vpow2.f32 %v1542_v19  ;;  %v235_v22 = vrot.slane %v197_v6, %v234_v21  ;;  %v246_v25 = vrot.slane %v197_v6, %v245_v23  ;;  %v257_v33 = vrot.slane %v197_v6, %v256_v26 }
  0x2d   : > { %v268_v36 = vrot.slane %v197_v6, %v267_v34  ;;  %v279_v38 = vrot.slane %v197_v6, %v278_v37  ;;  %v301_v51 = vrot.slane %v198_v40, %v212_v7  ;;  %v312_v52 = vrot.slane %v198_v40, %v223_v15 }
  0x2e   : > { %v323_v53 = vrot.slane %v198_v40, %v234_v21 }
  0x2f   : > { %219 = vbcast.lane.b32.xlu1 %v213_v10, 264  ;;  %208 = vbcast.lane.b32.xlu0 %v202_v11, 264 }
  0x33   : > { %230 = vbcast.lane.b32.xlu1 %v224_v20, 264  ;;  %226 = vbcast.lane.b32.xlu0 %v224_v20, 256  ;;  %v1635_v24 = vpop.eup %1634 }
  0x34   : > { %v1637_v27 = vpop.eup %1636  ;;  %v1184_v28 = vadd.f32 1.0, %v1635_v24 }
  0x35   : > { %v1639_v29 = vpop.eup %1638  ;;  %v1186_v30 = vadd.f32 1.0, %v1637_v27 }
  0x36   : > { %v1641_v31 = vpop.eup %1640  ;;  %1642 = vrcp.f32 %v1184_v28  ;;  %v1183_v32 = vadd.f32 1.0, %v1639_v29 }
  0x37   : > { %241 = vbcast.lane.b32.xlu1 %v235_v22, 264  ;;  %237 = vbcast.lane.b32.xlu0 %v235_v22, 256  ;;  %1644 = vrcp.f32 %v1186_v30  ;;  %v1185_v35 = vadd.f32 1.0, %v1641_v31 }
  0x38   : > { %1646 = vrcp.f32 %v1183_v32 }
  0x39   : > { %1648 = vrcp.f32 %v1185_v35 }
  0x3b   : > { %252 = vbcast.lane.b32.xlu1 %v246_v25, 264  ;;  %248 = vbcast.lane.b32.xlu0 %v246_v25, 256 }
  0x3f   : > { %263 = vbcast.lane.b32.xlu1 %v257_v33, 264  ;;  %259 = vbcast.lane.b32.xlu0 %v257_v33, 256 }
  0x40   : > { %v1643_v39 = vpop.eup %1642 }
  0x41   : > { %v1645_v41 = vpop.eup %1644  ;;  %v1196_v42 = vmul.f32 %v1643_v39, %v1754_v9 }
  0x42   : > { %v1647_v43 = vpop.eup %1646  ;;  %v1198_v44 = vmul.f32 %v1645_v41, %v1767_v14 }
  0x43   : > { %274 = vbcast.lane.b32.xlu1 %v268_v36, 264  ;;  %270 = vbcast.lane.b32.xlu0 %v268_v36, 256  ;;  %v1649_v45 = vpop.eup %1648  ;;  %v1195_v47 = vmul.f32 %v1647_v43, %v1761_v12 }
  0x44   : > { %v1555_v48 = vpack.c.bf16 %v1198_v44, %v1196_v42  ;;  %v1197_v49 = vmul.f32 %v1649_v45, %v1764_v13 }
  0x46   : > { %1556 = vmatprep.subr.bf16.mxu0 %v1555_v48  ;;  %1591 = vmatprep.subr.bf16.mxu1 %v1555_v48  ;;  %v1557_v50 = vpack.c.bf16 %v1197_v49, %v1195_v47 }
  0x47   : > { %285 = vbcast.lane.b32.xlu1 %v279_v38, 264  ;;  %281 = vbcast.lane.b32.xlu0 %v279_v38, 256 }
  0x48   : > { %1558 = vmatpush1.bf16.msra.mxu0 %v1557_v50  ;;  %1600 = vmatpush1.bf16.msra.mxu1 %v1557_v50 }
  0x4b   : > { %296 = vbcast.lane.b32.xlu1 %v290_v46, 264  ;;  %292 = vbcast.lane.b32.xlu0 %v290_v46, 256 }
  0x4f   : > { %307 = vbcast.lane.b32.xlu1 %v301_v51, 264  ;;  %303 = vbcast.lane.b32.xlu0 %v301_v51, 256 }
  0x53   : > { %318 = vbcast.lane.b32.xlu1 %v312_v52, 264  ;;  %314 = vbcast.lane.b32.xlu0 %v312_v52, 256 }
  0x57   : > { %329 = vbcast.lane.b32.xlu1 %v323_v53, 264  ;;  %325 = vbcast.lane.b32.xlu0 %v323_v53, 256 }
  0x9d   : > { %v1794_v54 = vpop.permute.xlu1 %215  ;;  %v205_v55 = vpop.permute.xlu0 %204 }
  0x9e   : > { %v1798_v56 = vsub.f32 %v1761_v12, %v1794_v54  ;;  %v556_v57 = vsub.f32 %v1754_v9, %v1794_v54  ;;  %vm331_vm0 = vcmp.ge.f32.partialorder %v1761_v12, %v205_v55  ;;  %vm332_vm1 = vcmp.ge.f32.partialorder %v1754_v9, %v205_v55 }
  0x9f   : > { %vm375_vm2 = vcmp.lt.f32.partialorder %v1761_v12, %v1794_v54  ;;  %vm376_vm3 = vcmp.lt.f32.partialorder %v1754_v9, %v1794_v54  ;;  %v1809_v58 = vsub.f32 %v1761_v12, %v205_v55  ;;  %v1812_v59 = vsub.f32 %v1754_v9, %v205_v55 }
  0xa0   : > { %2946 = vst [vmem:[#allocation5_spill] sm:$0xff] %v1798_v56  ;;  %vm419_vm4 = vmand %vm331_vm0, %vm375_vm2  ;;  %vm336_vm6 = vcmp.ge.f32.partialorder %v1754_v9, %v1794_v54  ;;  %v1819_v62 = vmul.f32 2.5, %v1798_v56  ;;  %v1821_v63 = vmul.f32 2.5, %v556_v57  ;;  %v1824_v2 = vmul.f32 1.25, %v556_v57 }
  0xa1   : > { %2947 = vst [vmem:[#allocation6_spill] sm:$0xff] %v1809_v58  ;;  %vm420_vm5 = vmand %vm332_vm1, %vm376_vm3  ;;  %v1814_v60 = vpop.permute.xlu1 %219  ;;  %v209_v61 = vpop.permute.xlu0 %208  ;;  %v1496_v1 = vsel %vm419_vm4, 1.0, %v2915_v0  ;;  %v591_v3 = vmul.f32 2.5, %v1809_v58  ;;  %v592_v4 = vmul.f32 2.5, %v1812_v59  ;;  %v1833_v6 = vmul.f32 1.25, %v1798_v56 }
  0xa2   : > { %v1830_v5 = vsub.f32 %v1764_v13, %v1814_v60  ;;  %v1497_v7 = vsel %vm420_vm5, 1.0, %v2915_v0  ;;  %v1838_v8 = vsub.f32 %v1767_v14, %v1814_v60  ;;  %vm333_vm7 = vcmp.ge.f32.partialorder %v1764_v13, %v209_v61 }
  0xa3   : > { %v1841_v10 = vmul.f32 0.8333333, %v556_v57  ;;  %v1844_v11 = vmul.f32 1.25, %v1809_v58  ;;  %vm334_vm8 = vcmp.ge.f32.partialorder %v1767_v14, %v209_v61  ;;  %vm377_vm9 = vcmp.lt.f32.partialorder %v1764_v13, %v1814_v60 }
  0xa4   : > { %vm378_vm10 = vcmp.lt.f32.partialorder %v1767_v14, %v1814_v60  ;;  %v1856_v17 = vmul.f32 1.25, %v1812_v59  ;;  %vm338_vm11 = vcmp.ge.f32.partialorder %v1767_v14, %v1814_v60  ;;  %vm421_vm12 = vmand %vm333_vm7, %vm377_vm9  ;;  %v1861_v18 = vsub.f32 %v1764_v13, %v209_v61 }
  0xa5   : > { %2948 = vst [vmem:[#allocation7_spill] sm:$0xff] %v1841_v10  ;;  %v1851_v15 = vpop.permute.xlu1 %230  ;;  %v1853_v16 = vpop.permute.xlu0 %226  ;;  %v1864_v19 = vsub.f32 %v1767_v14, %v209_v61  ;;  %v1866_v20 = vmul.f32 %v1496_v1, %v591_v3  ;;  %v1868_v21 = vmul.f32 %v1497_v7, %v592_v4  ;;  %v1871_v22 = vmul.f32 2.5, %v1830_v5  ;;  %vm422_vm13 = vmand %vm334_vm8, %vm378_vm10 }
  0xa6   : > { %2949 = vst [vmem:[#allocation8_spill] sm:$0xff] %v1861_v18  ;;  %v1874_v23 = vmul.f32 2.5, %v1838_v8  ;;  %v1498_v24 = vsel %vm421_vm12, 1.0, %v2915_v0  ;;  %v1499_v25 = vsel %vm422_vm13, 1.0, %v2915_v0  ;;  %v593_v26 = vmul.f32 2.5, %v1861_v18 }
  0xa7   : > { %v594_v27 = vmul.f32 2.5, %v1864_v19  ;;  %v1882_v28 = vsub.f32 %v1764_v13, %v1851_v15  ;;  %v1886_v29 = vsub.f32 %v1767_v14, %v1851_v15  ;;  %v1890_v30 = vsub.f32 %v1761_v12, %v1853_v16 }
  0xa8   : > { %vm380_vm14 = vcmp.lt.f32.partialorder %v1754_v9, %v1853_v16  ;;  %v1899_v33 = vmul.f32 1.25, %v1861_v18  ;;  %v1902_v34 = vmul.f32 1.25, %v1864_v19  ;;  %v1906_v35 = vsub.f32 %v1754_v9, %v1853_v16 }
  0xa9   : > { %2950 = vst [vmem:[#allocation9_spill] sm:$0xff] %v1886_v29  ;;  %v1892_v31 = vpop.permute.xlu1 %241  ;;  %v1894_v32 = vpop.permute.xlu0 %237  ;;  %vm340_vm15 = vcmp.ge.f32.partialorder %v1754_v9, %v1853_v16  ;;  %v1910_v36 = vmul.f32 %v1498_v24, %v593_v26  ;;  %v1912_v37 = vmul.f32 %v1499_v25, %v594_v27  ;;  %vm342_vm0 = vcmp.ge.f32.partialorder %v1767_v14, %v1851_v15  ;;  %vm1923_vm1 = vmand %vm336_vm6, %vm380_vm14 }
  0xaa   : > { %2951 = vst [vmem:[#allocation10_spill] sm:$0xff] %v1906_v35  ;;  %v1916_v38 = vsub.f32 %v1764_v13, %v1892_v31  ;;  %v1929_v40 = vsub.f32 %v1767_v14, %v1892_v31  ;;  %vm382_vm2 = vcmp.lt.f32.partialorder %v1767_v14, %v1851_v15  ;;  %vm384_vm3 = vcmp.lt.f32.partialorder %v1754_v9, %v1894_v32 }
  0xab   : > { %vm386_vm4 = vcmp.lt.f32.partialorder %v1767_v14, %v1892_v31  ;;  %v1939_v41 = vsub.f32 %v1761_v12, %v1894_v32  ;;  %v1943_v42 = vsub.f32 %v1754_v9, %v1894_v32  ;;  %vm1952_vm5 = vmand %vm338_vm11, %vm382_vm2  ;;  %v632_v46 = vsub.f32 %v1853_v16, %v1754_v9 }
  0xac   : > { %2952 = vst [vmem:[#allocation11_spill] sm:$0xff] %v1916_v38  ;;  %2955 = vst [vmem:[#allocation12_spill] sm:$0xff] %v1929_v40  ;;  %v634_v47 = vsub.f32 %v1851_v15, %v1767_v14  ;;  %vm344_vm6 = vcmp.ge.f32.partialorder %v1754_v9, %v1894_v32  ;;  %vm346_vm7 = vcmp.ge.f32.partialorder %v1767_v14, %v1892_v31  ;;  %v1501_v49 = vsel %vm1923_vm1, 1.0, %v2915_v0 }
  0xad   : > { %2956 = vst [vmem:[#allocation13_spill] sm:$0xff] %v1939_v41  ;;  %2957 = vst [vmem:[#allocation14_spill] sm:$0xff] %v1943_v42  ;;  %v1945_v43 = vpop.permute.xlu1 %252  ;;  %v1947_v44 = vpop.permute.xlu0 %248  ;;  %v600_v50 = vmul.f32 2.5, %v1906_v35  ;;  %v602_v53 = vmul.f32 2.5, %v1886_v29  ;;  %v636_v57 = vsub.f32 %v1894_v32, %v1754_v9  ;;  %v638_v61 = vsub.f32 %v1892_v31, %v1767_v14 }
  0xae   : > { %vm1967_vm8 = vmand %vm340_vm15, %vm384_vm3  ;;  %v1977_v51 = vsub.f32 %v1764_v13, %v1945_v43  ;;  %vm388_vm9 = vcmp.lt.f32.partialorder %v1754_v9, %v1947_v44  ;;  %vm390_vm10 = vcmp.lt.f32.partialorder %v1767_v14, %v1945_v43  ;;  %v1996_v55 = vsub.f32 %v1767_v14, %v1945_v43 }
  0xaf   : > { %vm1989_vm11 = vmand %vm342_vm0, %vm386_vm4  ;;  %v2004_v1 = vsub.f32 %v1947_v44, %v1754_v9  ;;  %v2008_v3 = vsub.f32 %v1761_v12, %v1947_v44  ;;  %v2019_v24 = vsub.f32 %v1945_v43, %v1767_v14  ;;  %v672_v25 = vmul.f32 2.5, %v632_v46 }
  0xb0   : > { %2962 = vst [vmem:[#allocation15_spill] sm:$0xff] %v1977_v51  ;;  %2965 = vst [vmem:[#allocation16_spill] sm:$0xff] %v1996_v55  ;;  %v674_v26 = vmul.f32 2.5, %v634_v47  ;;  %v2023_v27 = vsub.f32 %v1754_v9, %v1947_v44  ;;  %v1503_v39 = vsel %vm1952_vm5, 1.0, %v2915_v0  ;;  %v1505_v51 = vsel %vm1967_vm8, 1.0, %v2915_v0 }
  0xb1   : > { %vm432_vm12 = vmand %vm344_vm6, %vm388_vm9  ;;  %2966 = vst [vmem:[#allocation17_spill] sm:$0xff] %v2008_v3  ;;  %v2010_v4 = vpop.permute.xlu1 %263  ;;  %v2012_v7 = vpop.permute.xlu0 %259  ;;  %v1507_v3 = vsel %vm1989_vm11, 1.0, %v2915_v0  ;;  %v676_v46 = vmul.f32 2.5, %v636_v57  ;;  %v678_v47 = vmul.f32 2.5, %v638_v61  ;;  %v680_v56 = vmul.f32 2.5, %v2004_v1 }
  0xb2   : > { %2967 = vst [vmem:[#allocation18_spill] sm:$0xff] %v2010_v4  ;;  %vm434_vm13 = vmand %vm346_vm7, %vm390_vm10  ;;  %v2035_v55 = vsel %vm432_vm12, 1.0, %v2915_v0  ;;  %v2044_v45 = vsub.f32 %v1767_v14, %v2010_v4  ;;  %v682_v52 = vmul.f32 2.5, %v2019_v24  ;;  %v2052_v38 = vsub.f32 %v1761_v12, %v2012_v7 }
  0xb3   : > { %2968 = vst [vmem:[#allocation19_spill] sm:$0xff] %v2023_v27  ;;  %v2040_v27 = vsub.f32 %v1764_v13, %v2010_v4  ;;  %v2047_v48 = vsel %vm434_vm13, 1.0, %v2915_v0  ;;  %v752_v29 = vmul.f32 %v1501_v49, %v672_v25  ;;  %v754_v35 = vmul.f32 %v1503_v39, %v674_v26 }
  0xb4   : > { %2970 = vst [vmem:[#allocation21_spill] sm:$0xff] %v2044_v45  ;;  %2971 = vst [vmem:[#allocation22_spill] sm:$0xff] %v2052_v38  ;;  %v2060_v40 = vsub.f32 %v1754_v9, %v2012_v7  ;;  %v716_v0 = vmul.f32 %v1501_v49, %v1821_v63  ;;  %v718_v45 = vmul.f32 %v1503_v39, %v1874_v23 }
  0xb5   : > { %2969 = vst [vmem:[#allocation20_spill] sm:$0xff] %v2040_v27  ;;  %v2054_v41 = vpop.permute.xlu1 %274  ;;  %v2056_v10 = vpop.permute.xlu0 %270  ;;  %v756_v27 = vmul.f32 %v1505_v51, %v676_v46  ;;  %v720_v42 = vmul.f32 %v1505_v51, %v600_v50  ;;  %v722_v4 = vmul.f32 %v1507_v3, %v602_v53  ;;  %v758_v18 = vmul.f32 %v1507_v3, %v678_v47 }
  0xb6   : > { %2972 = vst [vmem:[#allocation23_spill] sm:$0xff] %v2060_v40  ;;  %v760_v38 = vmul.f32 %v2035_v55, %v680_v56  ;;  %v762_v58 = vmul.f32 %v2047_v48, %v682_v52  ;;  %v2068_v25 = vsub.f32 %v1764_v13, %v2054_v41  ;;  %v792_v26 = vadd.f32 %v752_v29, %v1868_v21 }
  0xb7   : > { %v794_v46 = vadd.f32 %v754_v35, %v1912_v37  ;;  %v796_v40 = vadd.f32 %v756_v27, %v716_v0  ;;  %v2074_v63 = vsub.f32 %v1767_v14, %v2054_v41  ;;  %v798_v49 = vadd.f32 %v758_v18, %v718_v45 }
  0xb8   : > { %2973 = vst [vmem:[#allocation24_spill] sm:$0xff] %v2068_v25  ;;  %v2078_v50 = vadd.f32 %v760_v38, %v720_v42  ;;  %v2080_v56 = vadd.f32 %v762_v58, %v722_v4  ;;  %vm335_vm14 = vcmp.ge.f32.partialorder %v1761_v12, %v1794_v54  ;;  %v2086_v21 = vsub.f32 %v1761_v12, %v2056_v10 }
  0xb9   : > { %2974 = vst [vmem:[#allocation25_spill] sm:$0xff] %v2074_v63  ;;  %v2076_v23 = vpop.permute.xlu1 %285  ;;  %v2090_v0 = vsub.f32 %v1754_v9, %v2056_v10  ;;  %v868_v29 = vmul.f32 1.25, %v636_v57  ;;  %v870_v35 = vmul.f32 1.25, %v638_v61  ;;  %vm337_vm15 = vcmp.ge.f32.partialorder %v1764_v13, %v1814_v60  ;;  %v2098_v18 = vpop.permute.xlu0 %281 }
  0xba   : > { %2975 = vst [vmem:[#allocation26_spill] sm:$0xff] %v2086_v21  ;;  %v2096_v58 = vsub.f32 %v1764_v13, %v2076_v23  ;;  %v838_v37 = vmul.f32 1.25, %v1838_v8  ;;  %v872_v38 = vmul.f32 1.25, %v2004_v1  ;;  %v874_v42 = vmul.f32 1.25, %v2019_v24 }
  0xbb   : > { %2976 = vst [vmem:[#allocation27_spill] sm:$0xff] %v2090_v0  ;;  %v904_v51 = vmul.f32 %v1856_v17, %v792_v26  ;;  %v906_v53 = vmul.f32 %v1902_v34, %v794_v46  ;;  %v940_v57 = vmul.f32 %v868_v29, %v796_v40  ;;  %v942_v61 = vmul.f32 %v870_v35, %v798_v49  ;;  %v2999_v0 = vld [vmem:[#allocation5_spill] sm:$0xff] }
  0xbc   : > { %2977 = vst [vmem:[#allocation28_spill] sm:$0xff] %v2096_v58  ;;  %v908_v3 = vmul.f32 %v1824_v2, %v796_v40  ;;  %v910_v4 = vmul.f32 %v838_v37, %v798_v49  ;;  %v944_v27 = vmul.f32 %v872_v38, %v2078_v50  ;;  %v946_v39 = vmul.f32 %v874_v42, %v2080_v56 }
  0xbd   : > { %v2110_v47 = vsub.f32 %v1767_v14, %v2076_v23  ;;  %v2114_v45 = vsub.f32 %v1761_v12, %v2098_v18  ;;  %v1012_v17 = vmul.f32 0.8333333, %v1812_v59  ;;  %v1014_v34 = vmul.f32 0.8333333, %v1864_v19 }
  0xbe   : > { %v976_v52 = vadd.f32 %v940_v57, %v904_v51  ;;  %v978_v26 = vadd.f32 %v942_v61, %v906_v53  ;;  %v2118_v2 = vadd.f32 %v944_v27, %v908_v3  ;;  %v2120_v40 = vadd.f32 %v946_v39, %v910_v4 }
  0xbf   : > { %2978 = vst [vmem:[#allocation29_spill] sm:$0xff] %v2110_v47  ;;  %2979 = vst [vmem:[#allocation30_spill] sm:$0xff] %v2114_v45  ;;  %v1044_v46 = vmul.f32 0.8333333, %v2004_v1  ;;  %v1046_v49 = vmul.f32 0.8333333, %v2019_v24  ;;  %vm339_vm0 = vcmp.ge.f32.partialorder %v1761_v12, %v1853_v16  ;;  %vm341_vm1 = vcmp.ge.f32.partialorder %v1764_v13, %v1851_v15 }
  0xc0   : > { %v1076_v29 = vmul.f32 %v1012_v17, %v976_v52  ;;  %v1078_v59 = vmul.f32 %v1014_v34, %v978_v26  ;;  %vm343_vm2 = vcmp.ge.f32.partialorder %v1761_v12, %v1894_v32  ;;  %vm345_vm3 = vcmp.ge.f32.partialorder %v1764_v13, %v1892_v31 }
  0xc1   : > { %v1108_v19 = vmul.f32 %v1044_v46, %v2118_v2  ;;  %v1110_v1 = vmul.f32 %v1046_v49, %v2120_v40  ;;  %vm379_vm4 = vcmp.lt.f32.partialorder %v1761_v12, %v1853_v16  ;;  %vm381_vm5 = vcmp.lt.f32.partialorder %v1764_v13, %v1851_v15 }
  0xc2   : > { %vm383_vm6 = vcmp.lt.f32.partialorder %v1761_v12, %v1894_v32  ;;  %vm385_vm7 = vcmp.lt.f32.partialorder %v1764_v13, %v1892_v31  ;;  %vm387_vm8 = vcmp.lt.f32.partialorder %v1761_v12, %v1947_v44  ;;  %vm389_vm9 = vcmp.lt.f32.partialorder %v1764_v13, %v1945_v43  ;;  %vm423_vm10 = vmand %vm335_vm14, %vm379_vm4 }
  0xc3   : > { %v1140_v24 = vadd.f32 %v1108_v19, %v1076_v29  ;;  %v1142_v35 = vadd.f32 %v1110_v1, %v1078_v59  ;;  %vm425_vm11 = vmand %vm337_vm15, %vm381_vm5  ;;  %v2980_v37 = vmov 0.0   ;;  %v599_v42 = vmul.f32 2.5, %v1890_v30 }
  0xc4   : > { %v1500_v38 = vsel %vm423_vm10, 1.0, %v2980_v37  ;;  %vm427_vm12 = vmand %vm339_vm0, %vm383_vm6  ;;  %v1502_v51 = vsel %vm425_vm11, 1.0, %v2980_v37  ;;  %v601_v53 = vmul.f32 2.5, %v1882_v28  ;;  %v631_v54 = vsub.f32 %v1853_v16, %v1761_v12 }
  0xc5   : > { %v633_v57 = vsub.f32 %v1851_v15, %v1764_v13  ;;  %v1559_v60 = vpack.c.bf16 %v1142_v35, %v1140_v24  ;;  %vm429_vm13 = vmand %vm341_vm1, %vm385_vm7  ;;  %v1504_v61 = vsel %vm427_vm12, 1.0, %v2980_v37  ;;  %v635_v3 = vsub.f32 %v1894_v32, %v1761_v12 }
  0xc6   : > { %v637_v4 = vsub.f32 %v1892_v31, %v1764_v13  ;;  %vm431_vm14 = vmand %vm343_vm2, %vm387_vm8  ;;  %v1506_v16 = vsel %vm429_vm13, 1.0, %v2980_v37  ;;  %v639_v15 = vsub.f32 %v1947_v44, %v1761_v12  ;;  %v641_v27 = vsub.f32 %v1945_v43, %v1764_v13 }
  0xc7   : > { %v671_v39 = vmul.f32 2.5, %v631_v54  ;;  %1560 = vmatprep.subr.bf16.mxu0 %v1559_v60  ;;  %1592 = vmatprep.subr.bf16.mxu1 %v1559_v60  ;;  %vm433_vm15 = vmand %vm345_vm3, %vm389_vm9  ;;  %v2192_v32 = vsel %vm431_vm14, 1.0, %v2980_v37  ;;  %v673_v17 = vmul.f32 2.5, %v633_v57  ;;  %v675_v34 = vmul.f32 2.5, %v635_v3 }
  0xc8   : > { %v677_v52 = vmul.f32 2.5, %v637_v4  ;;  %v2195_v26 = vsel %vm433_vm15, 1.0, %v2980_v37  ;;  %v679_v46 = vmul.f32 2.5, %v639_v15  ;;  %v681_v49 = vmul.f32 2.5, %v641_v27 }
  0xc9   : > { %v715_v29 = vmul.f32 %v1500_v38, %v1819_v62  ;;  %v717_v59 = vmul.f32 %v1502_v51, %v1871_v22  ;;  %v719_v19 = vmul.f32 %v1504_v61, %v599_v42  ;;  %v721_v1 = vmul.f32 %v1506_v16, %v601_v53  ;;  %v2206_v42 = vpop.permute.xlu1 %296 }
  0xca   : > { %v751_v24 = vmul.f32 %v1500_v38, %v671_v39  ;;  %v753_v31 = vmul.f32 %v1502_v51, %v673_v17  ;;  %v755_v35 = vmul.f32 %v1504_v61, %v675_v34  ;;  %v757_v54 = vmul.f32 %v1506_v16, %v677_v52  ;;  %2981 = vst [vmem:[#allocation31_spill] sm:$0xff] %v2206_v42  ;;  %v2210_v16 = vpop.permute.xlu0 %292 }
  0xcb   : > { %v759_v60 = vmul.f32 %v2192_v32, %v679_v46  ;;  %v761_v57 = vmul.f32 %v2195_v26, %v681_v49  ;;  %v837_v45 = vmul.f32 1.25, %v1830_v5  ;;  %v867_v47 = vmul.f32 1.25, %v635_v3  ;;  %2982 = vst [vmem:[#allocation32_spill] sm:$0xff] %v2210_v16  ;;  %v2984_v49 = vld [vmem:[#allocation6_spill] sm:$0xff] }
  0xcc   : > { %v791_v58 = vadd.f32 %v751_v24, %v1866_v20  ;;  %v793_v25 = vadd.f32 %v753_v31, %v1910_v36  ;;  %v795_v62 = vadd.f32 %v755_v35, %v715_v29  ;;  %v797_v21 = vadd.f32 %v757_v54, %v717_v59  ;;  %v2985_v59 = vld [vmem:[#allocation8_spill] sm:$0xff] }
  0xcd   : > { %v2204_v22 = vadd.f32 %v759_v60, %v719_v19  ;;  %v2208_v38 = vadd.f32 %v761_v57, %v721_v1  ;;  %v869_v51 = vmul.f32 1.25, %v637_v4  ;;  %v871_v53 = vmul.f32 1.25, %v639_v15 }
  0xce   : > { %v873_v61 = vmul.f32 1.25, %v641_v27  ;;  %v903_v20 = vmul.f32 %v1844_v11, %v791_v58  ;;  %v905_v39 = vmul.f32 %v1899_v33, %v793_v25  ;;  %v907_v3 = vmul.f32 %v1833_v6, %v795_v62  ;;  %v2246_v31 = vpop.permute.xlu0 %303 }
  0xcf   : > { %v909_v36 = vmul.f32 %v837_v45, %v797_v21  ;;  %v939_v17 = vmul.f32 %v867_v47, %v795_v62  ;;  %v941_v34 = vmul.f32 %v869_v51, %v797_v21  ;;  %v943_v52 = vmul.f32 %v871_v53, %v2204_v22  ;;  %v2986_v47 = vld [vmem:[#allocation18_spill] sm:$0xff] }
  0xd0   : > { %v945_v46 = vmul.f32 %v873_v61, %v2208_v38  ;;  %v2219_v4 = vsub.f32 %v1754_v9, %v2098_v18  ;;  %v1011_v29 = vmul.f32 0.8333333, %v2984_v49  ;;  %v1013_v19 = vmul.f32 0.8333333, %v2985_v59  ;;  %v2989_v51 = vld [vmem:[#allocation14_spill] sm:$0xff] }
  0xd1   : > { %v1043_v11 = vmul.f32 0.8333333, %v639_v15  ;;  %v975_v58 = vadd.f32 %v939_v17, %v903_v20  ;;  %v977_v33 = vadd.f32 %v941_v34, %v905_v39  ;;  %v2223_v25 = vadd.f32 %v943_v52, %v907_v3  ;;  %v2237_v15 = vpop.permute.xlu1 %307  ;;  %v2992_v34 = vld [vmem:[#allocation12_spill] sm:$0xff] }
  0xd2   : > { %2983 = vst [vmem:[#allocation33_spill] sm:$0xff] %v2219_v4  ;;  %v2225_v6 = vadd.f32 %v945_v46, %v909_v36  ;;  %v1045_v21 = vmul.f32 0.8333333, %v641_v27  ;;  %vm348_vm0 = vcmp.ge.f32.partialorder %v1754_v9, %v1947_v44  ;;  %vm392_vm1 = vcmp.lt.f32.partialorder %v1754_v9, %v2012_v7 }
  0xd3   : > { %vm394_vm2 = vcmp.lt.f32.partialorder %v1767_v14, %v2986_v47  ;;  %v2235_v45 = vsub.f32 %v1764_v13, %v2206_v42  ;;  %v1075_v1 = vmul.f32 %v1011_v29, %v975_v58  ;;  %v1107_v24 = vmul.f32 %v1043_v11, %v2223_v25  ;;  %vm436_vm4 = vmand %vm348_vm0, %vm392_vm1  ;;  %v2994_v58 = vld [vmem:[#allocation9_spill] sm:$0xff] }
  0xd4   : > { %vm350_vm3 = vcmp.ge.f32.partialorder %v1767_v14, %v1945_v43  ;;  %v2244_v27 = vsub.f32 %v1767_v14, %v2206_v42  ;;  %v1077_v35 = vmul.f32 %v1013_v19, %v977_v33  ;;  %v1109_v54 = vmul.f32 %v1045_v21, %v2225_v6  ;;  %v2993_v19 = vld [vmem:[#allocation10_spill] sm:$0xff] }
  0xd5   : > { %2987 = vst [vmem:[#allocation6_spill] sm:$0xff] %v2235_v45  ;;  %vm438_vm5 = vmand %vm350_vm3, %vm394_vm2  ;;  %v644_v60 = vsub.f32 %v2012_v7, %v1754_v9  ;;  %v1139_v57 = vadd.f32 %v1107_v24, %v1075_v1  ;;  %v2252_v62 = vsel %vm436_vm4, 1.0, %v2980_v37  ;;  %v604_v53 = vmul.f32 2.5, %v2989_v51 }
  0xd6   : > { %2988 = vst [vmem:[#allocation8_spill] sm:$0xff] %v2244_v27  ;;  %v646_v61 = vsub.f32 %v2986_v47, %v1767_v14  ;;  %v2259_v20 = vsub.f32 %v1761_v12, %v2210_v16  ;;  %v1141_v39 = vadd.f32 %v1109_v54, %v1077_v35  ;;  %v2262_v3 = vsel %vm438_vm5, 1.0, %v2980_v37  ;;  %v2275_v54 = vpop.permute.xlu1 %318 }
  0xd7   : > { %v684_v36 = vmul.f32 2.5, %v644_v60  ;;  %v2266_v17 = vsub.f32 %v1754_v9, %v2210_v16  ;;  %v606_v52 = vmul.f32 2.5, %v2992_v34  ;;  %v724_v49 = vmul.f32 %v2035_v55, %v604_v53 }
  0xd8   : > { %2990 = vst [vmem:[#allocation18_spill] sm:$0xff] %v2259_v20  ;;  %v686_v46 = vmul.f32 2.5, %v646_v61  ;;  %v1561_v29 = vpack.c.bf16 %v1141_v39, %v1139_v57  ;;  %v840_v11 = vmul.f32 1.25, %v2993_v19  ;;  %v842_v33 = vmul.f32 1.25, %v2994_v58  ;;  %v2282_v39 = vpop.permute.xlu0 %314 }
  0xd9   : > { %2991 = vst [vmem:[#allocation34_spill] sm:$0xff] %v2266_v17  ;;  %v764_v59 = vmul.f32 %v2252_v62, %v684_v36  ;;  %v726_v21 = vmul.f32 %v2047_v48, %v606_v52  ;;  %v876_v24 = vmul.f32 1.25, %v644_v60  ;;  %v878_v35 = vmul.f32 1.25, %v646_v61 }
  0xda   : > { %v766_v1 = vmul.f32 %v2262_v3, %v686_v46  ;;  %1562 = vmatpush1.bf16.msra.mxu0 %v1561_v29  ;;  %1601 = vmatpush1.bf16.msra.mxu1 %v1561_v29  ;;  %v912_v55 = vmul.f32 %v840_v11, %v2078_v50  ;;  %v914_v57 = vmul.f32 %v842_v33, %v2080_v56  ;;  %v1018_v53 = vmul.f32 0.8333333, %v1838_v8  ;;  %v2995_v46 = vld [vmem:[#allocation7_spill] sm:$0xff]  ;;  %v2997_v56 = vld [vmem:[#allocation13_spill] sm:$0xff] }
  0xdb   : > { %v2277_v45 = vadd.f32 %v764_v59, %v724_v49  ;;  %v1048_v48 = vmul.f32 0.8333333, %v644_v60  ;;  %v1050_v52 = vmul.f32 0.8333333, %v646_v61  ;;  %v1080_v20 = vmul.f32 %v2995_v46, %v2118_v2  ;;  %v2998_v61 = vld [vmem:[#allocation11_spill] sm:$0xff] }
  0xdc   : > { %v2284_v36 = vadd.f32 %v766_v1, %v726_v21  ;;  %v1082_v49 = vmul.f32 %v1018_v53, %v2120_v40  ;;  %v2292_v50 = vsub.f32 %v2275_v54, %v1764_v13  ;;  %v603_v29 = vmul.f32 2.5, %v2997_v56 }
  0xdd   : > { %v948_v27 = vmul.f32 %v876_v24, %v2277_v45  ;;  %v2298_v59 = vsub.f32 %v2275_v54, %v1767_v14  ;;  %v2302_v60 = vsub.f32 %v2282_v39, %v1761_v12  ;;  %vm347_vm6 = vcmp.ge.f32.partialorder %v1761_v12, %v1947_v44 }
  0xde   : > { %2996 = vst [vmem:[#allocation10_spill] sm:$0xff] %v2292_v50  ;;  %v950_v8 = vmul.f32 %v878_v35, %v2284_v36  ;;  %vm349_vm7 = vcmp.ge.f32.partialorder %v1764_v13, %v1945_v43  ;;  %vm391_vm8 = vcmp.lt.f32.partialorder %v1761_v12, %v2012_v7  ;;  %vm393_vm9 = vcmp.lt.f32.partialorder %v1764_v13, %v2986_v47 }
  0xdf   : > { %v2306_v2 = vadd.f32 %v948_v27, %v912_v55  ;;  %vm435_vm10 = vmand %vm347_vm6, %vm391_vm8  ;;  %v605_v11 = vmul.f32 2.5, %v2998_v61  ;;  %v643_v33 = vsub.f32 %v2012_v7, %v1761_v12  ;;  %v645_v44 = vsub.f32 %v2986_v47, %v1764_v13 }
  0xe0   : > { %v2314_v40 = vadd.f32 %v950_v8, %v914_v57  ;;  %vm437_vm11 = vmand %vm349_vm7, %vm393_vm9  ;;  %v2323_v43 = vsel %vm435_vm10, 1.0, %v2980_v37  ;;  %v723_v21 = vmul.f32 %v2192_v32, %v603_v29  ;;  %v839_v1 = vmul.f32 1.25, %v1890_v30 }
  0xe1   : > { %v1112_v27 = vmul.f32 %v1048_v48, %v2306_v2  ;;  %v2329_v35 = vsel %vm437_vm11, 1.0, %v2980_v37  ;;  %v683_v55 = vmul.f32 2.5, %v643_v33  ;;  %v685_v57 = vmul.f32 2.5, %v645_v44 }
  0xe2   : > { %v1114_v24 = vmul.f32 %v1050_v52, %v2314_v40  ;;  %v725_v46 = vmul.f32 %v2195_v26, %v605_v11  ;;  %v841_v48 = vmul.f32 1.25, %v1882_v28  ;;  %v875_v8 = vmul.f32 1.25, %v643_v33 }
  0xe3   : > { %v1144_v53 = vadd.f32 %v1112_v27, %v1080_v20  ;;  %v763_v4 = vmul.f32 %v2323_v43, %v683_v55  ;;  %v765_v32 = vmul.f32 %v2329_v35, %v685_v57  ;;  %v877_v29 = vmul.f32 1.25, %v645_v44 }
  0xe4   : > { %v1146_v17 = vadd.f32 %v1114_v24, %v1082_v49  ;;  %v911_v63 = vmul.f32 %v839_v1, %v2204_v22  ;;  %v913_v52 = vmul.f32 %v841_v48, %v2208_v38  ;;  %v1015_v42 = vmul.f32 0.8333333, %v2999_v0  ;;  %v3000_v38 = vld [vmem:[#allocation19_spill] sm:$0xff] }
  0xe5   : > { %v1017_v16 = vmul.f32 0.8333333, %v1830_v5  ;;  %v2339_v27 = vadd.f32 %v763_v4, %v723_v21  ;;  %v2341_v26 = vadd.f32 %v765_v32, %v725_v46  ;;  %v1047_v11 = vmul.f32 0.8333333, %v643_v33 }
  0xe6   : > { %v1563_v20 = vpack.c.bf16 %v1146_v17, %v1144_v53  ;;  %vm413_vm12 = vcmp.lt.f32.partialorder %v1764_v13, %v2275_v54  ;;  %v1049_v49 = vmul.f32 0.8333333, %v645_v44  ;;  %v1079_v24 = vmul.f32 %v1015_v42, %v2223_v25  ;;  %v3001_v42 = vld [vmem:[#allocation16_spill] sm:$0xff] }
  0xe7   : > { %v1081_v22 = vmul.f32 %v1017_v16, %v2225_v6  ;;  %vm352_vm13 = vcmp.ge.f32.partialorder %v1754_v9, %v2012_v7  ;;  %vm414_vm14 = vcmp.lt.f32.partialorder %v1767_v14, %v2275_v54  ;;  %v947_v5 = vmul.f32 %v875_v8, %v2339_v27 }
  0xe8   : > { %1564 = vmatprep.subr.bf16.mxu0 %v1563_v20  ;;  %1593 = vmatprep.subr.bf16.mxu1 %v1563_v20  ;;  %v949_v0 = vmul.f32 %v877_v29, %v2341_v26  ;;  %vm354_vm15 = vcmp.ge.f32.partialorder %v1767_v14, %v2986_v47  ;;  %v608_v4 = vmul.f32 2.5, %v3000_v38  ;;  %vm396_vm0 = vcmp.lt.f32.partialorder %v1754_v9, %v2056_v10 }
  0xe9   : > { %vm398_vm1 = vcmp.lt.f32.partialorder %v1767_v14, %v2054_v41  ;;  %v610_v16 = vmul.f32 2.5, %v3001_v42  ;;  %v648_v25 = vsub.f32 %v2056_v10, %v1754_v9  ;;  %v2363_v6 = vadd.f32 %v947_v5, %v911_v63  ;;  %vm440_vm2 = vmand %vm352_vm13, %vm396_vm0  ;;  %v330_v42 = vpop.permute.xlu1 %329 }
  0xea   : > { %v2365_v17 = vadd.f32 %v949_v0, %v913_v52  ;;  %v650_v33 = vsub.f32 %v2054_v41, %v1767_v14  ;;  %v728_v44 = vmul.f32 %v2252_v62, %v608_v4  ;;  %vm442_vm3 = vmand %vm354_vm15, %vm398_vm1  ;;  %v2371_v21 = vsel %vm440_vm2, 1.0, %v2980_v37 }
  0xeb   : > { %v688_v1 = vmul.f32 2.5, %v648_v25  ;;  %v730_v55 = vmul.f32 %v2262_v3, %v610_v16  ;;  %v844_v57 = vmul.f32 1.25, %v2989_v51  ;;  %v1111_v63 = vmul.f32 %v1047_v11, %v2363_v6 }
  0xec   : > { %v1113_v53 = vmul.f32 %v1049_v49, %v2365_v17  ;;  %v2378_v46 = vsel %vm442_vm3, 1.0, %v2980_v37  ;;  %v690_v48 = vmul.f32 2.5, %v650_v33  ;;  %v846_v62 = vmul.f32 1.25, %v2992_v34 }
  0xed   : > { %v768_v8 = vmul.f32 %v2371_v21, %v688_v1  ;;  %v880_v32 = vmul.f32 1.25, %v648_v25  ;;  %v882_v29 = vmul.f32 1.25, %v650_v33  ;;  %v1143_v52 = vadd.f32 %v1111_v63, %v1079_v24 }
  0xee   : > { %v1145_v20 = vadd.f32 %v1113_v53, %v1081_v22  ;;  %v770_v3 = vmul.f32 %v2378_v46, %v690_v48  ;;  %v916_v5 = vmul.f32 %v844_v57, %v2277_v45  ;;  %v918_v11 = vmul.f32 %v846_v62, %v2284_v36 }
  0xef   : > { %v2384_v0 = vadd.f32 %v768_v8, %v728_v44  ;;  %v1020_v49 = vmul.f32 0.8333333, %v2993_v19  ;;  %v1022_v4 = vmul.f32 0.8333333, %v2994_v58  ;;  %v1052_v34 = vmul.f32 0.8333333, %v648_v25 }
  0xf0   : > { %v1565_v16 = vpack.c.bf16 %v1145_v20, %v1143_v52  ;;  %v2389_v1 = vadd.f32 %v770_v3, %v730_v55  ;;  %v1054_v51 = vmul.f32 0.8333333, %v650_v33  ;;  %vm411_vm4 = vcmp.lt.f32.partialorder %v1761_v12, %v2282_v39 }
  0xf1   : > { %v952_v24 = vmul.f32 %v880_v32, %v2384_v0  ;;  %v1084_v45 = vmul.f32 %v1020_v49, %v2306_v2  ;;  %v1086_v22 = vmul.f32 %v1022_v4, %v2314_v40  ;;  %vm369_vm5 = vcmp.ge.f32.partialorder %v1764_v13, %v2237_v15 }
  0xf2   : > { %vm412_vm6 = vcmp.lt.f32.partialorder %v1754_v9, %v2282_v39  ;;  %1566 = vmatpush1.bf16.msra.mxu0 %v1565_v16  ;;  %1602 = vmatpush1.bf16.msra.mxu1 %v1565_v16  ;;  %v954_v19 = vmul.f32 %v882_v29, %v2389_v1  ;;  %vm370_vm7 = vcmp.ge.f32.partialorder %v1767_v14, %v2237_v15  ;;  %vm457_vm9 = vmand %vm369_vm5, %vm413_vm12  ;;  %v705_v58 = vmul.f32 2.5, %v2292_v50 }
  0xf3   : > { %vm373_vm8 = vcmp.ge.f32.partialorder %v1764_v13, %v2275_v54  ;;  %v2409_v36 = vadd.f32 %v952_v24, %v916_v5  ;;  %vm374_vm10 = vcmp.ge.f32.partialorder %v1767_v14, %v2275_v54  ;;  %vm417_vm11 = vcmp.lt.f32.partialorder %v1764_v13, %v330_v42  ;;  %vm458_vm15 = vmand %vm370_vm7, %vm414_vm14  ;;  %v326_v24 = vpop.permute.xlu0 %325 }
  0xf4   : > { %vm418_vm13 = vcmp.lt.f32.partialorder %v1767_v14, %v330_v42  ;;  %v2418_v2 = vadd.f32 %v954_v19, %v918_v11  ;;  %vm461_vm0 = vmand %vm373_vm8, %vm417_vm11  ;;  %v1534_v40 = vsel %vm457_vm9, 1.0, %v2980_v37  ;;  %v1535_v25 = vsel %vm458_vm15, 1.0, %v2980_v37 }
  0xf5   : > { %v589_v33 = vsub.f32 %v1764_v13, %v2237_v15  ;;  %v1116_v44 = vmul.f32 %v1052_v34, %v2409_v36  ;;  %vm462_vm12 = vmand %vm374_vm10, %vm418_vm13  ;;  %v1538_v55 = vsel %vm461_vm0, 1.0, %v2980_v37  ;;  %v590_v57 = vsub.f32 %v1767_v14, %v2237_v15 }
  0xf6   : > { %v669_v54 = vsub.f32 %v330_v42, %v1764_v13  ;;  %v1118_v63 = vmul.f32 %v1054_v51, %v2418_v2  ;;  %v1539_v53 = vsel %vm462_vm12, 1.0, %v2980_v37  ;;  %v670_v8 = vsub.f32 %v330_v42, %v1767_v14 }
  0xf7   : > { %v629_v48 = vmul.f32 2.5, %v589_v33  ;;  %v1148_v62 = vadd.f32 %v1116_v44, %v1084_v45  ;;  %v630_v32 = vmul.f32 2.5, %v590_v57  ;;  %v706_v29 = vmul.f32 2.5, %v2298_v59 }
  0xf8   : > { %v709_v34 = vmul.f32 2.5, %v669_v54  ;;  %v2435_v52 = vsub.f32 %v2282_v39, %v1754_v9  ;;  %v1150_v20 = vadd.f32 %v1118_v63, %v1086_v22  ;;  %v710_v3 = vmul.f32 2.5, %v670_v8  ;;  %v2446_v22 = vld [vmem:[%s1751_s5 + $0x8] sm:$0xff] }
  0xf9   : > { %v749_v13 = vmul.f32 %v1534_v40, %v629_v48  ;;  %v750_v5 = vmul.f32 %v1535_v25, %v630_v32  ;;  %v2437_v51 = vmul.f32 %v1534_v40, %v705_v58  ;;  %v2439_v11 = vmul.f32 %v1535_v25, %v706_v29  ;;  %v2453_v25 = vld [vmem:[%s1751_s5] sm:$0xff] }
  0xfa   : > { %v789_v14 = vmul.f32 %v1538_v55, %v709_v34  ;;  %v1567_v42 = vpack.c.bf16 %v1150_v20, %v1148_v62  ;;  %v790_v49 = vmul.f32 %v1539_v53, %v710_v3  ;;  %v901_v4 = vmul.f32 1.25, %v669_v54 }
  0xfb   : > { %3002 = vst [vmem:[#allocation9_spill] sm:$0xff] %v2437_v51  ;;  %v902_v16 = vmul.f32 1.25, %v670_v8  ;;  %v2441_v19 = vmul.f32 0.8333333, %v669_v54  ;;  %vm367_vm14 = vcmp.ge.f32.partialorder %v1761_v12, %v2246_v31  ;;  %vm368_vm1 = vcmp.ge.f32.partialorder %v2446_v22, %v2246_v31 }
  0xfc   : > { %v829_v45 = vadd.f32 %v789_v14, %v749_v13  ;;  %1568 = vmatprep.subr.bf16.mxu0 %v1567_v42  ;;  %1594 = vmatprep.subr.bf16.mxu1 %v1567_v42  ;;  %v830_v58 = vadd.f32 %v790_v49, %v750_v5  ;;  %v2450_v40 = vmul.f32 0.8333333, %v670_v8  ;;  %vm371_vm2 = vcmp.ge.f32.partialorder %v2453_v25, %v2282_v39  ;;  %vm455_vm5 = vmand %vm367_vm14, %vm411_vm4 }
  0xfd   : > { %3003 = vst [vmem:[#allocation7_spill] sm:$0xff] %v2441_v19  ;;  %vm372_vm3 = vcmp.ge.f32.partialorder %v2446_v22, %v2282_v39  ;;  %vm415_vm7 = vcmp.lt.f32.partialorder %v2453_v25, %v326_v24  ;;  %vm416_vm8 = vcmp.lt.f32.partialorder %v2446_v22, %v326_v24  ;;  %vm456_vm9 = vmand %vm368_vm1, %vm412_vm6  ;;  %v703_v44 = vmul.f32 2.5, %v2302_v60 }
  0xfe   : > { %3004 = vst [vmem:[#allocation13_spill] sm:$0xff] %v2450_v40  ;;  %v2462_v33 = vmul.f32 %v901_v4, %v829_v45  ;;  %vm459_vm10 = vmand %vm371_vm2, %vm415_vm7  ;;  %v1532_v55 = vsel %vm455_vm5, 1.0, %v2980_v37  ;;  %v1533_v57 = vsel %vm456_vm9, 1.0, %v2980_v37  ;;  %v587_v12 = vsub.f32 %v2453_v25, %v2246_v31  ;;  %v2496_v45 = vld [vmem:[%s1751_s5 + $0x10] sm:$0xff] }
  0xff   : > { %v588_v54 = vsub.f32 %v2446_v22, %v2246_v31  ;;  %v2476_v63 = vmul.f32 %v902_v16, %v830_v58  ;;  %vm460_vm4 = vmand %vm372_vm3, %vm416_vm8  ;;  %v667_v53 = vsub.f32 %v326_v24, %v2453_v25  ;;  %v668_v9 = vsub.f32 %v326_v24, %v2446_v22  ;;  %v3010_v58 = vld [vmem:[#allocation17_spill] sm:$0xff] }
 0x100   : > { %3005 = vst [vmem:[#allocation11_spill] sm:$0xff] %v2462_v33  ;;  %v704_v39 = vmul.f32 2.5, %v2435_v52  ;;  %v1536_v48 = vsel %vm459_vm10, 1.0, %v2980_v37  ;;  %v1537_v8 = vsel %vm460_vm4, 1.0, %v2980_v37  ;;  %v627_v62 = vmul.f32 2.5, %v587_v12 }
 0x101   : > { %3006 = vst [vmem:[#allocation5_spill] sm:$0xff] %v2476_v63  ;;  %v628_v32 = vmul.f32 2.5, %v588_v54  ;;  %v707_v29 = vmul.f32 2.5, %v667_v53  ;;  %v708_v34 = vmul.f32 2.5, %v668_v9  ;;  %v2483_v20 = vmul.f32 %v1532_v55, %v703_v44  ;;  %v3011_v54 = vld [vmem:[#allocation15_spill] sm:$0xff] }
 0x102   : > { %v2485_v3 = vmul.f32 %v1533_v57, %v704_v39  ;;  %v747_v13 = vmul.f32 %v1532_v55, %v627_v62  ;;  %v899_v14 = vmul.f32 1.25, %v667_v53  ;;  %v900_v42 = vmul.f32 1.25, %v668_v9 }
 0x103   : > { %3007 = vst [vmem:[#allocation19_spill] sm:$0xff] %v2483_v20  ;;  %v748_v5 = vmul.f32 %v1533_v57, %v628_v32  ;;  %v787_v49 = vmul.f32 %v1536_v48, %v707_v29  ;;  %v788_v4 = vmul.f32 %v1537_v8, %v708_v34  ;;  %v2487_v16 = vmul.f32 0.8333333, %v667_v53 }
 0x104   : > { %v2489_v24 = vmul.f32 0.8333333, %v668_v9  ;;  %vm351_vm6 = vcmp.ge.f32.partialorder %v2453_v25, %v2012_v7  ;;  %vm395_vm11 = vcmp.lt.f32.partialorder %v2453_v25, %v2056_v10  ;;  %vm397_vm13 = vcmp.lt.f32.partialorder %v2496_v45, %v2054_v41 }
 0x105   : > { %3008 = vst [vmem:[#allocation35_spill] sm:$0xff] %v2487_v16  ;;  %v607_v44 = vmul.f32 2.5, %v3010_v58  ;;  %v827_v55 = vadd.f32 %v787_v49, %v747_v13  ;;  %v828_v57 = vadd.f32 %v788_v4, %v748_v5  ;;  %vm353_vm15 = vcmp.ge.f32.partialorder %v2496_v45, %v2986_v47  ;;  %vm439_vm0 = vmand %vm351_vm6, %vm395_vm11 }
 0x106   : > { %3009 = vst [vmem:[#allocation36_spill] sm:$0xff] %v2489_v24  ;;  %v647_v12 = vsub.f32 %v2056_v10, %v2453_v25  ;;  %vm441_vm12 = vmand %vm353_vm15, %vm397_vm13  ;;  %v2506_v7 = vsel %vm439_vm0, 1.0, %v2980_v37  ;;  %v609_v53 = vmul.f32 2.5, %v3011_v54  ;;  %v649_v9 = vsub.f32 %v2054_v41, %v2496_v45 }
 0x107   : > { %v727_v39 = vmul.f32 %v2323_v43, %v607_v44  ;;  %v2512_v48 = vmul.f32 %v899_v14, %v827_v55  ;;  %v2515_v8 = vsel %vm441_vm12, 1.0, %v2980_v37  ;;  %v843_v62 = vmul.f32 1.25, %v2997_v56 }
 0x108   : > { %v687_v47 = vmul.f32 2.5, %v647_v12  ;;  %v2518_v32 = vmul.f32 %v900_v42, %v828_v57  ;;  %v689_v29 = vmul.f32 2.5, %v649_v9  ;;  %v729_v34 = vmul.f32 %v2329_v35, %v609_v53 }
 0x109   : > { %3012 = vst [vmem:[#allocation17_spill] sm:$0xff] %v2512_v48  ;;  %v845_v13 = vmul.f32 1.25, %v2998_v61  ;;  %v879_v49 = vmul.f32 1.25, %v647_v12  ;;  %v881_v43 = vmul.f32 1.25, %v649_v9  ;;  %v1019_v14 = vmul.f32 0.8333333, %v1890_v30 }
 0x10a   : > { %3013 = vst [vmem:[#allocation15_spill] sm:$0xff] %v2518_v32  ;;  %v767_v5 = vmul.f32 %v2506_v7, %v687_v47  ;;  %v769_v4 = vmul.f32 %v2515_v8, %v689_v29  ;;  %v915_v44 = vmul.f32 %v843_v62, %v2339_v27  ;;  %v1021_v42 = vmul.f32 0.8333333, %v1882_v28  ;;  %v2540_v27 = vld [vmem:[%s1751_s5 + $0x18] sm:$0xff]  ;;  %v3014_v28 = vld [vmem:[#allocation23_spill] sm:$0xff]  ;;  %s1495_s5 = sshll.u32 %s169_s28, 6 }
 0x10b   : > { %v917_v55 = vmul.f32 %v845_v13, %v2341_v26  ;;  %v1051_v35 = vmul.f32 0.8333333, %v647_v12  ;;  %v1053_v53 = vmul.f32 0.8333333, %v649_v9  ;;  %v1083_v19 = vmul.f32 %v1019_v14, %v2363_v6  ;;  %s2863_s6 = scalar_lea.vmem [#allocation4], %s1495_s5 }
 0x10c   : > { %v2528_v57 = vadd.f32 %v767_v5, %v727_v39  ;;  %v2531_v47 = vadd.f32 %v769_v4, %v729_v34  ;;  %v1085_v16 = vmul.f32 %v1021_v42, %v2365_v17  ;;  %vm356_vm14 = vcmp.ge.f32.partialorder %v2446_v22, %v2056_v10  ;;  %v3015_v17 = vld [vmem:[#allocation21_spill] sm:$0xff] }
 0x10d   : > { %vm400_vm1 = vcmp.lt.f32.partialorder %v2446_v22, %v2098_v18  ;;  %vm358_vm2 = vcmp.ge.f32.partialorder %v2540_v27, %v2054_v41  ;;  %vm402_vm3 = vcmp.lt.f32.partialorder %v2540_v27, %v2076_v23  ;;  %v612_v26 = vmul.f32 2.5, %v3014_v28 }
 0x10e   : > { %v951_v30 = vmul.f32 %v879_v49, %v2528_v57  ;;  %vm444_vm5 = vmand %vm356_vm14, %vm400_vm1  ;;  %v953_v6 = vmul.f32 %v881_v43, %v2531_v47  ;;  %v614_v12 = vmul.f32 2.5, %v3015_v17  ;;  %v652_v9 = vsub.f32 %v2098_v18, %v2446_v22 }
 0x10f   : > { %vm446_vm7 = vmand %vm358_vm2, %vm402_vm3  ;;  %v654_v39 = vsub.f32 %v2076_v23, %v2540_v27  ;;  %v2556_v29 = vsel %vm444_vm5, 1.0, %v2980_v37  ;;  %v732_v13 = vmul.f32 %v2371_v21, %v612_v26  ;;  %v848_v42 = vmul.f32 1.25, %v3000_v38 }
 0x110   : > { %v2553_v62 = vadd.f32 %v951_v30, %v915_v44  ;;  %v2559_v34 = vsel %vm446_vm7, 1.0, %v2980_v37  ;;  %v2562_v5 = vadd.f32 %v953_v6, %v917_v55  ;;  %v692_v49 = vmul.f32 2.5, %v652_v9  ;;  %v3016_v44 = vld [vmem:[#allocation16_spill] sm:$0xff]  ;;  %v3017_v6 = vld [vmem:[#allocation14_spill] sm:$0xff] }
 0x111   : > { %v694_v43 = vmul.f32 2.5, %v654_v39  ;;  %v734_v14 = vmul.f32 %v2378_v46, %v614_v12  ;;  %v850_v30 = vmul.f32 1.25, %v3016_v44  ;;  %v884_v33 = vmul.f32 1.25, %v652_v9  ;;  %v3018_v46 = vld [vmem:[#allocation12_spill] sm:$0xff] }
 0x112   : > { %v1115_v4 = vmul.f32 %v1051_v35, %v2553_v62  ;;  %v1117_v48 = vmul.f32 %v1053_v53, %v2562_v5  ;;  %v772_v40 = vmul.f32 %v2556_v29, %v692_v49  ;;  %v886_v21 = vmul.f32 1.25, %v654_v39 }
 0x113   : > { %v774_v24 = vmul.f32 %v2559_v34, %v694_v43  ;;  %v920_v26 = vmul.f32 %v848_v42, %v2384_v0  ;;  %v1024_v63 = vmul.f32 0.8333333, %v3017_v6  ;;  %v1026_v12 = vmul.f32 0.8333333, %v3018_v46 }
 0x114   : > { %v1147_v55 = vadd.f32 %v1115_v4, %v1083_v19  ;;  %v1149_v35 = vadd.f32 %v1117_v48, %v1085_v16  ;;  %v2574_v32 = vadd.f32 %v772_v40, %v732_v13  ;;  %v922_v20 = vmul.f32 %v850_v30, %v2389_v1  ;;  %v3019_v1 = vld [vmem:[#allocation22_spill] sm:$0xff] }
 0x115   : > { %v2576_v51 = vadd.f32 %v774_v24, %v734_v14  ;;  %v1056_v53 = vmul.f32 0.8333333, %v652_v9  ;;  %v1058_v50 = vmul.f32 0.8333333, %v654_v39  ;;  %v1088_v49 = vmul.f32 %v1024_v63, %v2409_v36 }
 0x116   : > { %v1090_v43 = vmul.f32 %v1026_v12, %v2418_v2  ;;  %v1569_v19 = vpack.c.bf16 %v1149_v35, %v1147_v55  ;;  %v956_v0 = vmul.f32 %v884_v33, %v2574_v32  ;;  %vm355_vm8 = vcmp.ge.f32.partialorder %v2453_v25, %v2056_v10  ;;  %v3020_v33 = vld [vmem:[#allocation20_spill] sm:$0xff] }
 0x117   : > { %v958_v4 = vmul.f32 %v886_v21, %v2576_v51  ;;  %vm357_vm9 = vcmp.ge.f32.partialorder %v2496_v45, %v2054_v41  ;;  %vm399_vm10 = vcmp.lt.f32.partialorder %v2453_v25, %v2098_v18  ;;  %vm401_vm4 = vcmp.lt.f32.partialorder %v2496_v45, %v2076_v23 }
 0x118   : > { %v611_v36 = vmul.f32 2.5, %v3019_v1  ;;  %1570 = vmatpush1.bf16.msra.mxu0 %v1569_v19  ;;  %1603 = vmatpush1.bf16.msra.mxu1 %v1569_v19  ;;  %v2592_v2 = vadd.f32 %v956_v0, %v920_v26  ;;  %vm443_vm6 = vmand %vm355_vm8, %vm399_vm10  ;;  %v613_v10 = vmul.f32 2.5, %v3020_v33  ;;  %v651_v41 = vsub.f32 %v2098_v18, %v2453_v25 }
 0x119   : > { %v2594_v40 = vadd.f32 %v958_v4, %v922_v20  ;;  %vm445_vm11 = vmand %vm357_vm9, %vm401_vm4  ;;  %v2600_v63 = vsel %vm443_vm6, 1.0, %v2980_v37  ;;  %v653_v16 = vsub.f32 %v2076_v23, %v2496_v45  ;;  %v847_v48 = vmul.f32 1.25, %v3010_v58 }
 0x11a   : > { %v731_v24 = vmul.f32 %v2506_v7, %v611_v36  ;;  %v1120_v20 = vmul.f32 %v1056_v53, %v2592_v2  ;;  %v2609_v39 = vsel %vm445_vm11, 1.0, %v2980_v37  ;;  %v691_v13 = vmul.f32 2.5, %v651_v41  ;;  %v3022_v36 = vld [vmem:[#allocation31_spill] sm:$0xff] }
 0x11b   : > { %v1122_v9 = vmul.f32 %v1058_v50, %v2594_v40  ;;  %v693_v14 = vmul.f32 2.5, %v653_v16  ;;  %v733_v42 = vmul.f32 %v2515_v8, %v613_v10  ;;  %v849_v30 = vmul.f32 1.25, %v3011_v54 }
 0x11c   : > { %v883_v21 = vmul.f32 1.25, %v651_v41  ;;  %v1152_v55 = vadd.f32 %v1120_v20, %v1088_v49  ;;  %v771_v7 = vmul.f32 %v2600_v63, %v691_v13  ;;  %v885_v6 = vmul.f32 1.25, %v653_v16 }
 0x11d   : > { %v1154_v26 = vadd.f32 %v1122_v9, %v1090_v43  ;;  %v773_v46 = vmul.f32 %v2609_v39, %v693_v14  ;;  %v919_v12 = vmul.f32 %v847_v48, %v2528_v57  ;;  %v1023_v50 = vmul.f32 0.8333333, %v2997_v56  ;;  %v3021_v57 = vld [vmem:[#allocation32_spill] sm:$0xff] }
 0x11e   : > { %v1025_v35 = vmul.f32 0.8333333, %v2998_v61  ;;  %v2618_v19 = vadd.f32 %v771_v7, %v731_v24  ;;  %v921_v8 = vmul.f32 %v849_v30, %v2531_v47  ;;  %v1055_v0 = vmul.f32 0.8333333, %v651_v41  ;;  %v3024_v24 = vld [vmem:[#allocation25_spill] sm:$0xff] }
 0x11f   : > { %v1571_v53 = vpack.c.bf16 %v1154_v26, %v1152_v55  ;;  %v2621_v4 = vadd.f32 %v773_v46, %v733_v42  ;;  %v1087_v49 = vmul.f32 %v1023_v50, %v2553_v62  ;;  %vm360_vm13 = vcmp.ge.f32.partialorder %v2446_v22, %v2098_v18  ;;  %v3023_v62 = vld [vmem:[#allocation27_spill] sm:$0xff] }
 0x120   : > { %v1089_v43 = vmul.f32 %v1025_v35, %v2562_v5  ;;  %v955_v56 = vmul.f32 %v883_v21, %v2618_v19  ;;  %v1057_v61 = vmul.f32 0.8333333, %v653_v16  ;;  %vm362_vm15 = vcmp.ge.f32.partialorder %v2540_v27, %v2076_v23 }
 0x121   : > { %1572 = vmatprep.subr.bf16.mxu0 %v1571_v53  ;;  %1595 = vmatprep.subr.bf16.mxu1 %v1571_v53  ;;  %vm404_vm0 = vcmp.lt.f32.partialorder %v2446_v22, %v3021_v57  ;;  %v957_v47 = vmul.f32 %v885_v6, %v2621_v4  ;;  %vm406_vm12 = vcmp.lt.f32.partialorder %v2540_v27, %v3022_v36  ;;  %v616_v5 = vmul.f32 2.5, %v3023_v62 }
 0x122   : > { %vm448_vm14 = vmand %vm360_vm13, %vm404_vm0  ;;  %v656_v10 = vsub.f32 %v3021_v57, %v2446_v22  ;;  %v2638_v41 = vadd.f32 %v955_v56, %v919_v12  ;;  %v618_v48 = vmul.f32 2.5, %v3024_v24  ;;  %v658_v20 = vsub.f32 %v3022_v36, %v2540_v27 }
 0x123   : > { %vm450_vm1 = vmand %vm362_vm15, %vm406_vm12  ;;  %v2641_v16 = vsel %vm448_vm14, 1.0, %v2980_v37  ;;  %v2646_v9 = vadd.f32 %v957_v47, %v921_v8  ;;  %v736_v42 = vmul.f32 %v2556_v29, %v616_v5  ;;  %v852_v26 = vmul.f32 1.25, %v3014_v28 }
 0x124   : > { %v2649_v13 = vsel %vm450_vm1, 1.0, %v2980_v37  ;;  %v696_v14 = vmul.f32 2.5, %v656_v10  ;;  %v1119_v30 = vmul.f32 %v1055_v0, %v2638_v41  ;;  %v698_v21 = vmul.f32 2.5, %v658_v20 }
 0x125   : > { %v738_v55 = vmul.f32 %v2559_v34, %v618_v48  ;;  %v1121_v7 = vmul.f32 %v1057_v61, %v2646_v9  ;;  %v854_v46 = vmul.f32 1.25, %v3015_v17  ;;  %v888_v12 = vmul.f32 1.25, %v656_v10 }
 0x126   : > { %v776_v6 = vmul.f32 %v2641_v16, %v696_v14  ;;  %v1151_v50 = vadd.f32 %v1119_v30, %v1087_v49  ;;  %v778_v35 = vmul.f32 %v2649_v13, %v698_v21  ;;  %v890_v53 = vmul.f32 1.25, %v658_v20 }
 0x127   : > { %v924_v29 = vmul.f32 %v852_v26, %v2574_v32  ;;  %v1153_v8 = vadd.f32 %v1121_v7, %v1089_v43  ;;  %v926_v34 = vmul.f32 %v854_v46, %v2576_v51  ;;  %v1028_v56 = vmul.f32 0.8333333, %v3000_v38 }
 0x128   : > { %v2660_v0 = vadd.f32 %v776_v6, %v736_v42  ;;  %v2664_v47 = vadd.f32 %v778_v35, %v738_v55  ;;  %v1030_v61 = vmul.f32 0.8333333, %v3016_v44  ;;  %v1060_v5 = vmul.f32 0.8333333, %v656_v10  ;;  %v3025_v44 = vld [vmem:[#allocation26_spill] sm:$0xff]  ;;  %v3026_v10 = vld [vmem:[#allocation24_spill] sm:$0xff] }
 0x129   : > { %v1062_v48 = vmul.f32 0.8333333, %v658_v20  ;;  %v1573_v14 = vpack.c.bf16 %v1153_v8, %v1151_v50  ;;  %v1092_v30 = vmul.f32 %v1028_v56, %v2592_v2  ;;  %vm359_vm2 = vcmp.ge.f32.partialorder %v2453_v25, %v2098_v18 }
 0x12a   : > { %v960_v49 = vmul.f32 %v888_v12, %v2660_v0  ;;  %v962_v32 = vmul.f32 %v890_v53, %v2664_v47  ;;  %v1094_v51 = vmul.f32 %v1030_v61, %v2594_v40  ;;  %vm403_vm3 = vcmp.lt.f32.partialorder %v2453_v25, %v3021_v57 }
 0x12b   : > { %vm405_vm5 = vcmp.lt.f32.partialorder %v2496_v45, %v3022_v36  ;;  %1574 = vmatpush1.bf16.msra.mxu0 %v1573_v14  ;;  %1604 = vmatpush1.bf16.msra.mxu1 %v1573_v14  ;;  %vm361_vm7 = vcmp.ge.f32.partialorder %v2496_v45, %v2076_v23  ;;  %vm447_vm8 = vmand %vm359_vm2, %vm403_vm3  ;;  %v615_v18 = vmul.f32 2.5, %v3025_v44  ;;  %v655_v2 = vsub.f32 %v3021_v57, %v2453_v25 }
 0x12c   : > { %v2677_v38 = vadd.f32 %v960_v49, %v924_v29  ;;  %v2684_v40 = vadd.f32 %v962_v32, %v926_v34  ;;  %vm449_vm9 = vmand %vm361_vm7, %vm405_vm5  ;;  %v2687_v43 = vsel %vm447_vm8, 1.0, %v2980_v37  ;;  %v617_v20 = vmul.f32 2.5, %v3026_v10 }
 0x12d   : > { %v657_v42 = vsub.f32 %v3022_v36, %v2496_v45  ;;  %v2694_v23 = vsel %vm449_vm9, 1.0, %v2980_v37  ;;  %v695_v55 = vmul.f32 2.5, %v655_v2  ;;  %v851_v26 = vmul.f32 1.25, %v3019_v1 }
 0x12e   : > { %v1124_v21 = vmul.f32 %v1060_v5, %v2677_v38  ;;  %v1126_v7 = vmul.f32 %v1062_v48, %v2684_v40  ;;  %v735_v46 = vmul.f32 %v2600_v63, %v615_v18  ;;  %v737_v12 = vmul.f32 %v2609_v39, %v617_v20 }
 0x12f   : > { %v697_v6 = vmul.f32 2.5, %v657_v42  ;;  %v775_v35 = vmul.f32 %v2687_v43, %v695_v55  ;;  %v853_v53 = vmul.f32 1.25, %v3020_v33  ;;  %v887_v29 = vmul.f32 1.25, %v655_v2 }
 0x130   : > { %v1156_v50 = vadd.f32 %v1124_v21, %v1092_v30  ;;  %v1158_v8 = vadd.f32 %v1126_v7, %v1094_v51  ;;  %v889_v56 = vmul.f32 1.25, %v657_v42  ;;  %v923_v61 = vmul.f32 %v851_v26, %v2618_v19  ;;  %v3028_v21 = vld [vmem:[#allocation29_spill] sm:$0xff] }
 0x131   : > { %v777_v34 = vmul.f32 %v2694_v23, %v697_v6  ;;  %v2704_v5 = vadd.f32 %v775_v35, %v735_v46  ;;  %v925_v48 = vmul.f32 %v853_v53, %v2621_v4  ;;  %v1027_v63 = vmul.f32 0.8333333, %v3010_v58 }
 0x132   : > { %v1029_v39 = vmul.f32 0.8333333, %v3011_v54  ;;  %v1575_v14 = vpack.c.bf16 %v1158_v8, %v1156_v50  ;;  %v1059_v30 = vmul.f32 0.8333333, %v655_v2  ;;  %v1061_v32 = vmul.f32 0.8333333, %v657_v42 }
 0x133   : > { %v2709_v49 = vadd.f32 %v777_v34, %v737_v12  ;;  %v959_v51 = vmul.f32 %v887_v29, %v2704_v5  ;;  %v1091_v18 = vmul.f32 %v1027_v63, %v2638_v41  ;;  %vm364_vm10 = vcmp.ge.f32.partialorder %v2446_v22, %v3021_v57  ;;  %v3027_v54 = vld [vmem:[#allocation33_spill] sm:$0xff] }
 0x134   : > { %v1093_v20 = vmul.f32 %v1029_v39, %v2646_v9  ;;  %1576 = vmatprep.subr.bf16.mxu0 %v1575_v14  ;;  %1596 = vmatprep.subr.bf16.mxu1 %v1575_v14  ;;  %vm408_vm4 = vcmp.lt.f32.partialorder %v2446_v22, %v2246_v31  ;;  %vm410_vm6 = vcmp.lt.f32.partialorder %v2540_v27, %v2237_v15  ;;  %v620_v19 = vmul.f32 2.5, %v3027_v54 }
 0x135   : > { %v961_v58 = vmul.f32 %v889_v56, %v2709_v49  ;;  %v2722_v4 = vadd.f32 %v959_v51, %v923_v61  ;;  %vm366_vm11 = vcmp.ge.f32.partialorder %v2540_v27, %v3022_v36  ;;  %vm452_vm13 = vmand %vm364_vm10, %vm408_vm4  ;;  %v660_v41 = vsub.f32 %v2246_v31, %v2446_v22 }
 0x136   : > { %v662_v9 = vsub.f32 %v2237_v15, %v2540_v27  ;;  %vm454_vm15 = vmand %vm366_vm11, %vm410_vm6  ;;  %v2733_v42 = vsel %vm452_vm13, 1.0, %v2980_v37  ;;  %v622_v55 = vmul.f32 2.5, %v3028_v21  ;;  %v740_v26 = vmul.f32 %v2641_v16, %v620_v19 }
 0x137   : > { %v2730_v2 = vadd.f32 %v961_v58, %v925_v48  ;;  %v1123_v7 = vmul.f32 %v1059_v30, %v2722_v4  ;;  %v2739_v6 = vsel %vm454_vm15, 1.0, %v2980_v37  ;;  %v700_v46 = vmul.f32 2.5, %v660_v41 }
 0x138   : > { %v702_v22 = vmul.f32 2.5, %v662_v9  ;;  %v742_v27 = vmul.f32 %v2649_v13, %v622_v55  ;;  %v856_v50 = vmul.f32 1.25, %v3023_v62  ;;  %v858_v35 = vmul.f32 1.25, %v3024_v24 }
 0x139   : > { %v1125_v12 = vmul.f32 %v1061_v32, %v2730_v2  ;;  %v1155_v53 = vadd.f32 %v1123_v7, %v1091_v18  ;;  %v780_v29 = vmul.f32 %v2733_v42, %v700_v46  ;;  %v892_v8 = vmul.f32 1.25, %v660_v41 }
 0x13a   : > { %v782_v16 = vmul.f32 %v2739_v6, %v702_v22  ;;  %v894_v56 = vmul.f32 1.25, %v662_v9  ;;  %v928_v61 = vmul.f32 %v856_v50, %v2660_v0  ;;  %v1032_v48 = vmul.f32 0.8333333, %v3014_v28  ;;  %v3029_v28 = vld [vmem:[#allocation30_spill] sm:$0xff]  ;;  %v3030_v0 = vld [vmem:[#allocation28_spill] sm:$0xff] }
 0x13b   : > { %v1157_v34 = vadd.f32 %v1125_v12, %v1093_v20  ;;  %v2749_v63 = vadd.f32 %v780_v29, %v740_v26  ;;  %v930_v13 = vmul.f32 %v858_v35, %v2664_v47  ;;  %v1034_v14 = vmul.f32 0.8333333, %v3015_v17 }
 0x13c   : > { %v2751_v39 = vadd.f32 %v782_v16, %v742_v27  ;;  %v1064_v32 = vmul.f32 0.8333333, %v660_v41  ;;  %v1066_v51 = vmul.f32 0.8333333, %v662_v9  ;;  %v1096_v18 = vmul.f32 %v1032_v48, %v2677_v38 }
 0x13d   : > { %v1577_v30 = vpack.c.bf16 %v1157_v34, %v1155_v53  ;;  %v964_v20 = vmul.f32 %v892_v8, %v2749_v63  ;;  %vm363_vm0 = vcmp.ge.f32.partialorder %v2453_v25, %v3021_v57  ;;  %vm365_vm12 = vcmp.ge.f32.partialorder %v2496_v45, %v3022_v36 }
 0x13e   : > { %v966_v58 = vmul.f32 %v894_v56, %v2751_v39  ;;  %vm407_vm14 = vcmp.lt.f32.partialorder %v2453_v25, %v2246_v31  ;;  %vm409_vm1 = vcmp.lt.f32.partialorder %v2496_v45, %v2237_v15  ;;  %v619_v17 = vmul.f32 2.5, %v3029_v28 }
 0x13f   : > { %1578 = vmatpush1.bf16.msra.mxu0 %v1577_v30  ;;  %1605 = vmatpush1.bf16.msra.mxu1 %v1577_v30  ;;  %v621_v47 = vmul.f32 2.5, %v3030_v0  ;;  %v1000_v38 = vadd.f32 %v964_v20, %v928_v61  ;;  %vm451_vm2 = vmand %vm363_vm0, %vm407_vm14  ;;  %v659_v57 = vsub.f32 %v2246_v31, %v2453_v25  ;;  %v661_v36 = vsub.f32 %v2237_v15, %v2496_v45 }
 0x140   : > { %v2768_v19 = vadd.f32 %v966_v58, %v930_v13  ;;  %v1098_v41 = vmul.f32 %v1034_v14, %v2684_v40  ;;  %vm453_vm3 = vmand %vm365_vm12, %vm409_vm1  ;;  %v1528_v9 = vsel %vm451_vm2, 1.0, %v2980_v37  ;;  %v739_v55 = vmul.f32 %v2687_v43, %v619_v17  ;;  %v3031_v13 = vld [vmem:[#allocation34_spill] sm:$0xff] }
 0x141   : > { %v741_v26 = vmul.f32 %v2694_v23, %v621_v47  ;;  %v1128_v7 = vmul.f32 %v1064_v32, %v1000_v38  ;;  %v1530_v22 = vsel %vm453_vm3, 1.0, %v2980_v37  ;;  %v699_v12 = vmul.f32 2.5, %v659_v57  ;;  %v3032_v32 = vld [vmem:[#allocation8_spill] sm:$0xff] }
 0x142   : > { %v1130_v46 = vmul.f32 %v1066_v51, %v2768_v19  ;;  %v701_v27 = vmul.f32 2.5, %v661_v36  ;;  %v855_v31 = vmul.f32 1.25, %v3025_v44  ;;  %v857_v15 = vmul.f32 1.25, %v3026_v10 }
 0x143   : > { %v891_v25 = vmul.f32 1.25, %v659_v57  ;;  %v1160_v45 = vadd.f32 %v1128_v7, %v1096_v18  ;;  %v779_v50 = vmul.f32 %v1528_v9, %v699_v12  ;;  %v893_v35 = vmul.f32 1.25, %v661_v36 }
 0x144   : > { %v1162_v40 = vadd.f32 %v1130_v46, %v1098_v41  ;;  %v781_v53 = vmul.f32 %v1530_v22, %v701_v27  ;;  %v927_v43 = vmul.f32 %v855_v31, %v2704_v5  ;;  %v929_v23 = vmul.f32 %v857_v15, %v2709_v49  ;;  %v3033_v15 = vld [vmem:[#allocation18_spill] sm:$0xff] }
 0x145   : > { %v1031_v29 = vmul.f32 0.8333333, %v3019_v1  ;;  %v819_v37 = vadd.f32 %v779_v50, %v739_v55  ;;  %v1033_v8 = vmul.f32 0.8333333, %v3020_v33  ;;  %v1063_v34 = vmul.f32 0.8333333, %v659_v57 }
 0x146   : > { %v1579_v16 = vpack.c.bf16 %v1162_v40, %v1160_v45  ;;  %v821_v56 = vadd.f32 %v781_v53, %v741_v26  ;;  %v1065_v61 = vmul.f32 0.8333333, %v661_v36  ;;  %v624_v14 = vmul.f32 2.5, %v3031_v13 }
 0x147   : > { %v1095_v48 = vmul.f32 %v1031_v29, %v2722_v4  ;;  %v963_v30 = vmul.f32 %v891_v25, %v819_v37  ;;  %v1097_v5 = vmul.f32 %v1033_v8, %v2730_v2  ;;  %v626_v49 = vmul.f32 2.5, %v3032_v32  ;;  %v3034_v25 = vld [vmem:[#allocation6_spill] sm:$0xff] }
 0x148   : > { %1580 = vmatprep.subr.bf16.mxu0 %v1579_v16  ;;  %1597 = vmatprep.subr.bf16.mxu1 %v1579_v16  ;;  %v860_v1 = vmul.f32 1.25, %v3027_v54  ;;  %v965_v51 = vmul.f32 %v893_v35, %v821_v56  ;;  %v744_v18 = vmul.f32 %v2733_v42, %v624_v14  ;;  %v862_v33 = vmul.f32 1.25, %v3028_v21  ;;  %v3036_v16 = vld [vmem:[#allocation19_spill] sm:$0xff] }
 0x149   : > { %v896_v20 = vmul.f32 1.25, %v2435_v52  ;;  %v999_v58 = vadd.f32 %v963_v30, %v927_v43  ;;  %v746_v4 = vmul.f32 %v2739_v6, %v626_v49  ;;  %v898_v17 = vmul.f32 1.25, %v2298_v59  ;;  %v3035_v43 = vld [vmem:[#allocation10_spill] sm:$0xff] }
 0x14a   : > { %v932_v47 = vmul.f32 %v860_v1, %v2749_v63  ;;  %v1001_v57 = vadd.f32 %v965_v51, %v929_v23  ;;  %v824_v2 = vadd.f32 %v2485_v3, %v744_v18  ;;  %v934_v36 = vmul.f32 %v862_v33, %v2751_v39 }
 0x14b   : > { %v1036_v41 = vmul.f32 0.8333333, %v3023_v62  ;;  %v1127_v55 = vmul.f32 %v1063_v34, %v999_v58  ;;  %v826_v42 = vadd.f32 %v2439_v11, %v746_v4  ;;  %v1038_v26 = vmul.f32 0.8333333, %v3024_v24  ;;  %v3037_v34 = vld [vmem:[#allocation9_spill] sm:$0xff] }
 0x14c   : > { %v1068_v7 = vmul.f32 0.8333333, %v2435_v52  ;;  %v1129_v46 = vmul.f32 %v1065_v61, %v1001_v57  ;;  %v968_v6 = vmul.f32 %v896_v20, %v824_v2  ;;  %v1070_v12 = vmul.f32 0.8333333, %v2298_v59 }
 0x14d   : > { %v1100_v27 = vmul.f32 %v1036_v41, %v1000_v38  ;;  %v1159_v63 = vadd.f32 %v1127_v55, %v1095_v48  ;;  %v970_v31 = vmul.f32 %v898_v17, %v826_v42  ;;  %v623_v3 = vmul.f32 2.5, %v3033_v15  ;;  %v3038_v55 = vld [vmem:[#allocation15_spill] sm:$0xff] }
 0x14e   : > { %v625_v39 = vmul.f32 2.5, %v3034_v25  ;;  %v1161_v45 = vadd.f32 %v1129_v46, %v1097_v5  ;;  %v1004_v62 = vadd.f32 %v968_v6, %v932_v47  ;;  %v1102_v40 = vmul.f32 %v1038_v26, %v2768_v19  ;;  %v3039_v26 = vld [vmem:[#allocation5_spill] sm:$0xff] }
 0x14f   : > { %v859_v11 = vmul.f32 1.25, %v3029_v28  ;;  %v1006_v24 = vadd.f32 %v970_v31, %v934_v36  ;;  %v743_v50 = vmul.f32 %v1528_v9, %v623_v3  ;;  %v861_v35 = vmul.f32 1.25, %v3030_v0  ;;  %v3041_v31 = vld [vmem:[#allocation13_spill] sm:$0xff] }
 0x150   : > { %v745_v52 = vmul.f32 %v1530_v22, %v625_v39  ;;  %v1581_v53 = vpack.c.bf16 %v1161_v45, %v1159_v63  ;;  %v1132_v59 = vmul.f32 %v1068_v7, %v1004_v62  ;;  %v895_v38 = vmul.f32 1.25, %v2302_v60  ;;  %v3043_v45 = vld [vmem:[#allocation11_spill] sm:$0xff] }
 0x151   : > { %v897_v23 = vmul.f32 1.25, %v3035_v43  ;;  %v1134_v29 = vmul.f32 %v1070_v12, %v1006_v24  ;;  %v823_v8 = vadd.f32 %v3036_v16, %v743_v50  ;;  %v931_v48 = vmul.f32 %v859_v11, %v819_v37  ;;  %v1236_v12 = vld [vmem:[%s2900_s2 + $0x8] sm:$0xff]  ;;  %v1235_v16 = vld [vmem:[%s2900_s2] sm:$0xff] }
 0x152   : > { %v825_v61 = vadd.f32 %v3037_v34, %v745_v52  ;;  %1582 = vmatpush1.bf16.msra.mxu0 %v1581_v53  ;;  %1606 = vmatpush1.bf16.msra.mxu1 %v1581_v53  ;;  %v1164_v19 = vadd.f32 %v1132_v59, %v1100_v27  ;;  %v933_v14 = vmul.f32 %v861_v35, %v821_v56  ;;  %v1035_v9 = vmul.f32 0.8333333, %v3025_v44  ;;  %v3040_v27 = vld [vmem:[#allocation36_spill] sm:$0xff]  ;;  %v1240_v11 = vld [vmem:[%s2900_s2 + $0x28] sm:$0xff]  ;;  %v3044_v35 = vld [vmem:[#allocation35_spill] sm:$0xff] }
 0x153   : > { %v1037_v22 = vmul.f32 0.8333333, %v3026_v10  ;;  %v1166_v30 = vadd.f32 %v1134_v29, %v1102_v40  ;;  %v967_v5 = vmul.f32 %v895_v38, %v823_v8  ;;  %v1067_v1 = vmul.f32 0.8333333, %v2302_v60  ;;  %v3045_v59 = vld [vmem:[#allocation7_spill] sm:$0xff]  ;;  %v1238_v34 = vld [vmem:[%s2900_s2 + $0x18] sm:$0xff] }
 0x154   : > { %v969_v49 = vmul.f32 %v897_v23, %v825_v61  ;;  %v1069_v51 = vmul.f32 0.8333333, %v3035_v43  ;;  %v1099_v18 = vmul.f32 %v1035_v9, %v999_v58  ;;  %v864_v33 = vmul.f32 1.25, %v3031_v13 }
 0x155   : > { %v866_v37 = vmul.f32 1.25, %v3032_v32  ;;  %v1583_v20 = vpack.c.bf16 %v1166_v30, %v1164_v19  ;;  %v1003_v4 = vadd.f32 %v967_v5, %v931_v48  ;;  %v1101_v56 = vmul.f32 %v1037_v22, %v1001_v57  ;;  %v1237_v48 = vld [vmem:[%s2900_s2 + $0x10] sm:$0xff] }
 0x156   : > { %v1005_v17 = vadd.f32 %v969_v49, %v933_v14  ;;  %v936_v47 = vmul.f32 %v864_v33, %v824_v2  ;;  %v1040_v10 = vmul.f32 0.8333333, %v3027_v54  ;;  %v863_v36 = vmul.f32 1.25, %v3033_v15  ;;  %v3042_v15 = vld [vmem:[#allocation17_spill] sm:$0xff]  ;;  %v1241_v19 = vld [vmem:[%s2900_s2 + $0x30] sm:$0xff] }
 0x157   : > { %v938_v44 = vmul.f32 %v866_v37, %v826_v42  ;;  %1584 = vmatprep.subr.bf16.mxu0 %v1583_v20  ;;  %1598 = vmatprep.subr.bf16.mxu1 %v1583_v20  ;;  %v1131_v60 = vmul.f32 %v1067_v1, %v1003_v4  ;;  %v1042_v58 = vmul.f32 0.8333333, %v3028_v21  ;;  %v865_v13 = vmul.f32 1.25, %v3034_v25 }
 0x158   : > { %v1133_v41 = vmul.f32 %v1069_v51, %v1005_v17  ;;  %v1008_v32 = vadd.f32 %v3038_v55, %v936_v47  ;;  %v1104_v46 = vmul.f32 %v1040_v10, %v1004_v62  ;;  %v935_v57 = vmul.f32 %v863_v36, %v823_v8  ;;  %v1239_v8 = vld [vmem:[%s2900_s2 + $0x20] sm:$0xff] }
 0x159   : > { %v1010_v7 = vadd.f32 %v3039_v26, %v938_v44  ;;  %v1163_v2 = vadd.f32 %v1131_v60, %v1099_v18  ;;  %v1106_v6 = vmul.f32 %v1042_v58, %v1006_v24  ;;  %v937_v54 = vmul.f32 %v865_v13, %v825_v61  ;;  %v1242_v61 = vld [vmem:[%s2900_s2 + $0x38] sm:$0xff] }
 0x15a   : > { %v1165_v42 = vadd.f32 %v1133_v41, %v1101_v56  ;;  %v1136_v63 = vmul.f32 %v3040_v27, %v1008_v32  ;;  %v1007_v3 = vadd.f32 %v3042_v15, %v935_v57  ;;  %v1039_v25 = vmul.f32 0.8333333, %v3029_v28 }
 0x15b   : > { %v1138_v21 = vmul.f32 %v3041_v31, %v1010_v7  ;;  %v1009_v62 = vadd.f32 %v3043_v45, %v937_v54  ;;  %v1041_v40 = vmul.f32 0.8333333, %v3030_v0  ;;  %vm1279_vm5 = vcmask 130048  }
 0x15c   : > { %v1585_v39 = vpack.c.bf16 %v1165_v42, %v1163_v2  ;;  %v1168_v24 = vadd.f32 %v1136_v63, %v1104_v46  ;;  %v1103_v52 = vmul.f32 %v1039_v25, %v1003_v4  ;;  %v1135_v53 = vmul.f32 %v3044_v35, %v1007_v3  ;;  %1544 = vmatprep.mubr.msk.f32.mxu0 %vm1279_vm5, %v1236_v12 }
 0x15d   : > { %v1170_v50 = vadd.f32 %v1138_v21, %v1106_v6  ;;  %v1105_v28 = vmul.f32 %v1041_v40, %v1005_v17  ;;  %v1137_v38 = vmul.f32 %v3045_v59, %v1009_v62  ;;  %1546 = vmatprep.mubr.msk.f32.mxu1 %vm1279_vm5, %v1240_v11 }
 0x15e   : > { %1586 = vmatpush1.bf16.msra.mxu0 %v1585_v39  ;;  %1607 = vmatpush1.bf16.msra.mxu1 %v1585_v39  ;;  %v1167_v23 = vadd.f32 %v1135_v53, %v1103_v52 }
 0x15f   : > { %v1587_v43 = vpack.c.bf16 %v1170_v50, %v1168_v24  ;;  %v1169_v0 = vadd.f32 %v1137_v38, %v1105_v28 }
 0x161   : > { %1588 = vmatprep.subr.bf16.mxu0 %v1587_v43  ;;  %1599 = vmatprep.subr.bf16.mxu1 %v1587_v43  ;;  %v1589_v29 = vpack.c.bf16 %v1169_v0, %v1167_v23 }
 0x163   : > { %1590 = vmatpush1.bf16.msra.mxu0 %v1589_v29  ;;  %1608 = vmatpush1.bf16.msra.mxu1 %v1589_v29 }
 0x166   : > { %1357 = vmatmul.mubr.f32.vlgmr.msra.gmra.mrb[0].mxu0 %v1235_v16  ;;  %1369 = vmatmul.mubr.f32.vlgmr.msra.gmra.mrb[0].mxu1 %v1239_v8 }
 0x167   : > { %1545 = vmatprep.mubr.msk.f32.mxu0 %vm1279_vm5, %v1238_v34  ;;  %1547 = vmatprep.mubr.msk.f32.mxu1 %vm1279_vm5, %v1242_v61 }
 0x16a   : > { %1363 = vmatmul.mubr.f32.gmra.mrb[2].mxu0 %v1237_v48  ;;  %1375 = vmatmul.mubr.f32.gmra.mrb[2].mxu1 %v1241_v19 }
 0x239   : > { %v1358_v14 = vpop.f32.mrb[0].mxu0  ;;  %v1370_v9 = vpop.f32.mrb[0].mxu1  ;;  %1395 = sbr.rel (!%p1729_p5) target bundleno = 585 (0x249), region = 59 }
 0x23a   : > { %1381 = vst [vmem:[%s2863_s6] sm:$0xff] %v1358_v14  ;;  %1385 = vst [vmem:[%s2863_s6 + $0x20] sm:$0xff] %v1370_v9  ;;  %v1360_v22 = vpop.f32.mrb[1].mxu0  ;;  %v1372_v30 = vpop.f32.mrb[1].mxu1 }
 0x23b   : > { %1382 = vst [vmem:[%s2863_s6 + $0x8] sm:$0xff] %v1360_v22  ;;  %1386 = vst [vmem:[%s2863_s6 + $0x28] sm:$0xff] %v1372_v30 }
 0x23d   : > { %v1364_v5 = vpop.f32.mrb[2].mxu0  ;;  %v1376_v49 = vpop.f32.mrb[2].mxu1 }
 0x23e   : > { %1383 = vst [vmem:[%s2863_s6 + $0x10] sm:$0xff] %v1364_v5  ;;  %1387 = vst [vmem:[%s2863_s6 + $0x30] sm:$0xff] %v1376_v49  ;;  %v1366_v1 = vpop.f32.mrb[3].mxu0  ;;  %v1378_v51 = vpop.f32.mrb[3].mxu1 }
 0x23f   : > { %1384 = vst [vmem:[%s2863_s6 + $0x18] sm:$0xff] %v1366_v1  ;;  %1388 = vst [vmem:[%s2863_s6 + $0x38] sm:$0xff] %v1378_v51 }
 0x241   : > { %v1411_v18 = vld [vmem:[%s2863_s6] sm:$0xff] }
 0x242   : > { %v1413_v33 = vld [vmem:[%s2863_s6 + $0x8] sm:$0xff]  ;;  %v1419_v4 = vld [vmem:[%s2863_s6 + $0x20] sm:$0xff]  ;;  %1412 = vst [vmem:[%s1398_s8] sm:$0xff] %v1411_v18 }
 0x243   : > { %v1421_v17 = vld [vmem:[%s2863_s6 + $0x28] sm:$0xff]  ;;  %1414 = vst [vmem:[%s1398_s8 + $0x8] sm:$0xff] %v1413_v33  ;;  %1420 = vst [vmem:[%s1398_s8 + $0x40] sm:$0xff] %v1419_v4 }
 0x244   : > { %1422 = vst [vmem:[%s1398_s8 + $0x48] sm:$0xff] %v1421_v17 }
 0x245   : > { %v1415_v37 = vld [vmem:[%s2863_s6 + $0x10] sm:$0xff] }
 0x246   : > { %v1417_v20 = vld [vmem:[%s2863_s6 + $0x18] sm:$0xff]  ;;  %1416 = vst [vmem:[%s1398_s8 + $0x20] sm:$0xff] %v1415_v37  ;;  %v1423_v56 = vld [vmem:[%s2863_s6 + $0x30] sm:$0xff] }
 0x247   : > { %1418 = vst [vmem:[%s1398_s8 + $0x28] sm:$0xff] %v1417_v20  ;;  %v1425_v47 = vld [vmem:[%s2863_s6 + $0x38] sm:$0xff]  ;;  %1424 = vst [vmem:[%s1398_s8 + $0x60] sm:$0xff] %v1423_v56 }
 0x248   : > { %1426 = vst [vmem:[%s1398_s8 + $0x68] sm:$0xff] %v1425_v47 }
 0x249 PF: > { %p10_p10 = scmp.ge.s32.totalorder %s1716_s16, 4   ;;  %s3046_s12 = smov %s1672_s13 }
 0x24a   : > { %s3047_s13 = smov %s1727_s19  ;;  %s3048_s14 = smov %s1716_s16 }
 0x24b   :  { %12 = sbr.rel (!%p10_p10) target bundleno = 2 (0x2), region = 113 }

</bundles_post_ra>
